<compile_context>
chip_gen: v7x
topology: tpu7x:2x2x1
jax: 0.10.0
libtpu: 0.0.40
codegen_flags: <defaults>
</compile_context>

<pallas_src>
import functools

import jax
import jax.numpy as jnp
from jax import lax
from jax.experimental import pallas as pl
from jax.experimental.pallas import tpu as pltpu

NEG_SLOPE = 0.01  # PyTorch LeakyReLU default


def _leaky(v):
    # max(v, 0.01*v) == LeakyReLU(v) since 0 < NEG_SLOPE < 1.
    return jnp.maximum(v, NEG_SLOPE * v)


def nhgrid_kernel(spacings, hash_size,
                  x_ref, w1f_ref, b1_ref, w2_ref, b2_ref,
                  w3t_ref, b3_ref, w4_ref, b4_ref, out_ref):
    t = x_ref.shape[1]                       # TILE_N (points along lanes)
    h = hash_size                            # rows per hash table

    pow2 = (hash_size & (hash_size - 1)) == 0

    def _mod(v):                             # v is a non-negative int32 tensor
        if pow2:
            return v & (hash_size - 1)
        return lax.rem(v, hash_size)

    xy = x_ref[...] * 0.5 + 0.5              # [2, T], now in [0, 1]
    px = xy[0:1, :]                          # [1, T]
    py = xy[1:2, :]

    row_iota = lax.broadcasted_iota(jnp.int32, (h, t), 0)   # [H, T], hoisted

    # Hash factors are (1, 256); if hashSize divides 256 the y coordinate
    # drops out of the hash, so corners sharing cx hit the same table row.
    collapse = (256 % hash_size) == 0

    # Layer 1 is accumulated per level (no [L*H, T] concat): each level's
    # weighted one-hot hits the MXU immediately against a static slice of the
    # table-fused W1 (bf16), then dies.
    h1pre = None
    for lvl, spacing in enumerate(spacings):
        sx = px * spacing                    # [1, T]
        sy = py * spacing
        fx = jnp.floor(sx)
        fy = jnp.floor(sy)
        frac_x = sx - fx
        frac_y = sy - fy
        gx = 1.0 - frac_x
        gy = 1.0 - frac_y
        fx2, fy2 = frac_x * frac_x, frac_y * frac_y
        gx2, gy2 = gx * gx, gy * gy

        w00 = 1.42 - jnp.sqrt(fx2 + fy2)     # corner (+0, +0)
        w01 = 1.42 - jnp.sqrt(fx2 + gy2)     # corner (+0, +1)
        w10 = 1.42 - jnp.sqrt(gx2 + fy2)     # corner (+1, +0)
        w11 = 1.42 - jnp.sqrt(gx2 + gy2)     # corner (+1, +1)

        # F.normalize(p=1): max corner distance sqrt(2) < 1.42 so all weights
        # are positive, hence L1 norm == sum; one EUP approx reciprocal.
        wsum = (w00 + w01) + (w10 + w11)
        inv = pl.reciprocal(jnp.maximum(wsum, 1e-12), approx=True)

        ix = fx.astype(jnp.int32)
        if collapse:
            # One compare only; the (+1, *) corners hit row (h0 + 1) mod H,
            # which is exactly a +1 sublane rotation (XLU) of the (+0, *)
            # one-hot, so we reuse the same mask with a second weight value.
            h0 = _mod(ix)
            mask0 = row_iota == h0
            sel0 = jnp.where(mask0, (w00 + w01) * inv, 0.0)
            sel1 = jnp.where(mask0, (w10 + w11) * inv, 0.0)
            acc = sel0 + pltpu.roll(sel1, shift=1, axis=0)
        else:
            # General 4-corner fallback (hash factor does not collapse).
            iy = fy.astype(jnp.int32)
            acc = jnp.zeros((h, t), jnp.float32)
            for dx, dy, w in ((0, 0, w00), (0, 1, w01), (1, 0, w10), (1, 1, w11)):
                hidx = _mod((ix + dx) + (iy + dy) * 256)
                acc = acc + jnp.where(row_iota == hidx, w * inv, 0.0)

        # Selects built in f32 (v5e VPU has no bf16 ALU); single cast so the
        # MXU is fed bf16 (halves the vld bytes of the [H, T] block).
        d = jnp.dot(w1f_ref[:, lvl * h:(lvl + 1) * h],
                    acc.astype(jnp.bfloat16),
                    preferred_element_type=jnp.float32)
        h1pre = d if h1pre is None else h1pre + d

    h1 = _leaky(h1pre + b1_ref[...])                              # [32, T]
    # Layer 2: 32 -> 32, bf16 MXU feed, f32 accumulate.
    h2 = _leaky(jnp.dot(w2_ref[...], h1.astype(jnp.bfloat16),
                        preferred_element_type=jnp.float32) + b2_ref[...])
    # Layer 3 (32 -> 4): tiny dot on the otherwise-idle MXU.
    l3 = _leaky(jnp.dot(w3t_ref[...], h2,
                        preferred_element_type=jnp.float32) + b3_ref[...])
    # Layer 4 (4 -> 1): 4-row weighted sublane sum.
    o = jnp.sum(l3 * w4_ref[...], axis=0, keepdims=True) + b4_ref[...]
    # forward(..., trueRange=False) -> final LeakyReLU
    out_ref[...] = _leaky(o)


def nhgrid_forward(x, params, spacings, hash_size, tile_n=1024):
    n = x.shape[0]
    assert tile_n % 128 == 0
    assert hash_size > 0
    # Invariant behind the in-kernel "L1 norm == sum" shortcut: max corner
    # distance is sqrt(2) < 1.42, so all corner weights are positive.
    assert 1.42 > 2.0 ** 0.5

    # v7x has 2 TensorCores per chip: keep the "parallel" N axis at >= 2 grid
    # steps when there is enough work so both cores get a share.
    if n > 2 * 128:
        half = -(-((n + 1) // 2) // 128) * 128          # ceil(n/2) to 128
        tile_n = min(tile_n, max(128, half))

    n_pad = pl.cdiv(n, tile_n) * tile_n
    num_tiles = n_pad // tile_n

    # Points along lanes: [2, N_pad], zero-padded (padded columns are sliced
    # off at the end and never mix with real columns).
    xt = jnp.zeros((2, n_pad), jnp.float32).at[:, :n].set(
        x.astype(jnp.float32).T)

    tables = params["tables"]                            # [L, H, F]
    l, h, f = tables.shape
    w1 = params["w1"]                                    # [L*F, 32] (in, out)
    out1 = w1.shape[1]
    # Fuse the embedding tables into the first linear layer (both constants):
    #   concat_l(onehot_l @ tab_l) @ W1 == onehot_all @ stack_l(tab_l @ W1_l)
    # Pre-cast to bf16 so the per-level layer-1 dots run at native MXU rate.
    w1f = jnp.einsum("lhf,lfo->lho", tables,
                     w1.reshape(l, f, out1)).reshape(l * h, out1).T
    w1f = w1f.astype(jnp.bfloat16)                       # [32, L*H]

    args = (
        xt,
        w1f, params["b1"].reshape(-1, 1),
        params["w2"].T.astype(jnp.bfloat16), params["b2"].reshape(-1, 1),
        params["w3"].T, params["b3"].reshape(-1, 1),      # [4, 32], [4, 1]
        params["w4"], params["b4"].reshape(-1, 1),        # [4, 1],  [1, 1]
    )

    def const_spec(a):                                   # weights stay resident
        return pl.BlockSpec(a.shape, lambda i: (0, 0))

    in_specs = [pl.BlockSpec((2, tile_n), lambda i: (0, i))]
    in_specs += [const_spec(a) for a in args[1:]]

    # Advisory cost hint for XLA's scheduler around the custom call.
    flops = num_tiles * tile_n * (2 * 32 * (l * h + 32 + 4) + 2 * 4)
    transc = num_tiles * tile_n * 5 * l                  # 4 sqrt + 1 rcp / level
    byts = sum(int(a.size * a.dtype.itemsize) for a in args) + 4 * n_pad

    kern = functools.partial(nhgrid_kernel,
                             tuple(float(s) for s in spacings), int(hash_size))
    out = pl.pallas_call(
        kern,
        grid=(num_tiles,),
        in_specs=in_specs,
        out_specs=pl.BlockSpec((1, tile_n), lambda i: (0, i)),
        out_shape=jax.ShapeDtypeStruct((1, n_pad), jnp.float32),
        compiler_params=pltpu.CompilerParams(
            dimension_semantics=("parallel",),
            vmem_limit_bytes=32 * 1024 * 1024),
        cost_estimate=pl.CostEstimate(flops=int(flops),
                                      transcendentals=int(transc),
                                      bytes_accessed=int(byts)),
    )(*args)
    return out[0, :n].reshape(n, 1)


def nhgrid_reference(x, params, spacings, hash_size):
    """Pure-JAX mirror of the PyTorch forward pass (for verification)."""
    xs = x * 0.5 + 0.5
    offsets = jnp.array([[0., 0.], [0., 1.], [1., 0.], [1., 1.]], jnp.float32)
    feats = []
    for lvl, spacing in enumerate(spacings):
        s = xs * spacing                                          # [N, 2]
        corners = jnp.floor(s)[:, None, :] + offsets[None]        # [N, 4, 2]
        dist = jnp.sqrt(jnp.sum((s[:, None, :] - corners) ** 2, axis=-1))
        w = 1.42 - dist                                           # [N, 4]
        w = w / jnp.maximum(jnp.sum(jnp.abs(w), axis=1, keepdims=True), 1e-12)
        idx = jnp.mod(corners[..., 0] + corners[..., 1] * 256.0,
                      float(hash_size)).astype(jnp.int32)         # [N, 4]
        feat = jnp.sum(params["tables"][lvl][idx] * w[..., None], axis=1)
        feats.append(feat)
    hcat = jnp.concatenate(feats, axis=1)
    act = _leaky(hcat @ params["w1"] + params["b1"])
    act = _leaky(act @ params["w2"] + params["b2"])
    act = _leaky(act @ params["w3"] + params["b3"])
    return _leaky(act @ params["w4"] + params["b4"])


if __name__ == "__main__":
    numInputFeatures = 2        # x is a batch of 2-D coordinates
    numGridFeatures = 8
    gridLevels = 4
    hashSize = 128
    N = 1000
    TILE_N = 256                # multiple of 128; grid of 4 tiles (N padded)

    # hashSpacing[i] = 256 // 1.3**(gridLevels - i - 1)
    spacings = [float(256 // (1.3 ** (gridLevels - i - 1)))
                for i in range(gridLevels)]

    key = jax.random.PRNGKey(0)
    ks = jax.random.split(key, 6)

    # Embedding weights: uniform(-1e-4, 1e-4)
    tables = jax.random.uniform(ks[0], (gridLevels, hashSize, numGridFeatures),
                                jnp.float32, -1e-4, 1e-4)
    in_dim = gridLevels * numGridFeatures
    # Linear weights: uniform(-1/8, 1/8), stored [in, out]; biases zero.
    w1 = jax.random.uniform(ks[1], (in_dim, 32), jnp.float32, -1.0 / 8, 1.0 / 8)
    w2 = jax.random.uniform(ks[2], (32, 32), jnp.float32, -1.0 / 8, 1.0 / 8)
    w3 = jax.random.uniform(ks[3], (32, 4), jnp.float32, -1.0 / 8, 1.0 / 8)
    w4 = jax.random.uniform(ks[4], (4, 1), jnp.float32, -1.0 / 8, 1.0 / 8)
    b1 = jnp.zeros((1, 32), jnp.float32)
    b2 = jnp.zeros((1, 32), jnp.float32)
    b3 = jnp.zeros((1, 4), jnp.float32)
    b4 = jnp.zeros((1, 1), jnp.float32)

    params = dict(tables=tables, w1=w1, b1=b1, w2=w2, b2=b2,
                  w3=w3, b3=b3, w4=w4, b4=b4)

    # Input coordinates in [-1, 1] (mapped to [0, 1] inside the kernel).
    x = jax.random.uniform(ks[5], (N, numInputFeatures), jnp.float32, -1.0, 1.0)

    out = nhgrid_forward(x, params, spacings, hashSize, tile_n=TILE_N)
    out = jax.block_until_ready(out)
    assert out.shape == (N, 1) and out.dtype == jnp.float32

    ref = nhgrid_reference(x, params, spacings, hashSize)
    ref = jax.block_until_ready(ref)
    # Tolerance covers the approx EUP reciprocal and the bf16 MXU feeds
    # (combined <~1% relative, ~1e-9 absolute at the output scale); still
    # catches any hashing / interpolation / MLP bug.
    assert jnp.allclose(out, ref, rtol=2e-2, atol=5e-8), float(
        jnp.max(jnp.abs(out - ref)))
    print("KERNEL_OK")
</pallas_src>

<mosaic_0001>
module attributes {stable_mosaic.version = 11 : i64} {
  func.func @nhgrid_kernel(%arg0: i32, %arg1: memref<2x256xf32, #tpu.memory_space<vmem>>, %arg2: memref<32x512xbf16, #tpu.memory_space<vmem>>, %arg3: memref<32x1xf32, #tpu.memory_space<vmem>>, %arg4: memref<32x32xbf16, #tpu.memory_space<vmem>>, %arg5: memref<32x1xf32, #tpu.memory_space<vmem>>, %arg6: memref<4x32xf32, #tpu.memory_space<vmem>>, %arg7: memref<4x1xf32, #tpu.memory_space<vmem>>, %arg8: memref<4x1xf32, #tpu.memory_space<vmem>>, %arg9: memref<1x1xf32, #tpu.memory_space<vmem>>, %arg10: memref<1x256xf32, #tpu.memory_space<vmem>>) attributes {dimension_semantics = [#tpu.dimension_semantics<parallel>], iteration_bounds = array<i64: 4>, scalar_prefetch = 0 : i64, scratch_operands = 0 : i64, tpu.core_type = #tpu.core_type<tc>, window_params = [{transform_indices = @transform_0, window_bounds = array<i64: 2, 256>}, {pipeline_mode = #tpu.pipeline_mode<synchronous>, transform_indices = @transform_1, window_bounds = array<i64: 32, 512>}, {pipeline_mode = #tpu.pipeline_mode<synchronous>, transform_indices = @transform_2, window_bounds = array<i64: 32, 1>}, {pipeline_mode = #tpu.pipeline_mode<synchronous>, transform_indices = @transform_3, window_bounds = array<i64: 32, 32>}, {pipeline_mode = #tpu.pipeline_mode<synchronous>, transform_indices = @transform_4, window_bounds = array<i64: 32, 1>}, {pipeline_mode = #tpu.pipeline_mode<synchronous>, transform_indices = @transform_5, window_bounds = array<i64: 4, 32>}, {pipeline_mode = #tpu.pipeline_mode<synchronous>, transform_indices = @transform_6, window_bounds = array<i64: 4, 1>}, {pipeline_mode = #tpu.pipeline_mode<synchronous>, transform_indices = @transform_7, window_bounds = array<i64: 4, 1>}, {pipeline_mode = #tpu.pipeline_mode<synchronous>, transform_indices = @transform_8, window_bounds = array<i64: 1, 1>}, {transform_indices = @transform_9, window_bounds = array<i64: 1, 256>}]} {
    %c0 = arith.constant 0 : index
    %c0_0 = arith.constant 0 : index
    %0 = vector.load %arg1[%c0, %c0_0] : memref<2x256xf32, #tpu.memory_space<vmem>>, vector<2x256xf32>
    %cst = arith.constant 5.000000e-01 : f32
    %1 = vector.broadcast %cst : f32 to vector<2x256xf32>
    %2 = arith.mulf %0, %1 : vector<2x256xf32>
    %cst_1 = arith.constant 5.000000e-01 : f32
    %3 = vector.broadcast %cst_1 : f32 to vector<2x256xf32>
    %4 = arith.addf %2, %3 : vector<2x256xf32>
    %5 = vector.extract_strided_slice %4 {offsets = [0, 0], sizes = [1, 256], strides = [1, 1]} : vector<2x256xf32> to vector<1x256xf32>
    %6 = vector.extract_strided_slice %4 {offsets = [1, 0], sizes = [1, 256], strides = [1, 1]} : vector<2x256xf32> to vector<1x256xf32>
    %7 = tpu.iota {dimensions = array<i32: 0>} : vector<128x256xi32>
    %cst_2 = arith.constant 1.160000e+02 : f32
    %8 = vector.broadcast %cst_2 : f32 to vector<1x256xf32>
    %9 = arith.mulf %5, %8 : vector<1x256xf32>
    %cst_3 = arith.constant 1.160000e+02 : f32
    %10 = vector.broadcast %cst_3 : f32 to vector<1x256xf32>
    %11 = arith.mulf %6, %10 : vector<1x256xf32>
    %12 = math.floor %9 : vector<1x256xf32>
    %13 = math.floor %11 : vector<1x256xf32>
    %14 = arith.subf %9, %12 : vector<1x256xf32>
    %15 = arith.subf %11, %13 : vector<1x256xf32>
    %cst_4 = arith.constant 1.000000e+00 : f32
    %16 = vector.broadcast %cst_4 : f32 to vector<1x256xf32>
    %17 = arith.subf %16, %14 : vector<1x256xf32>
    %cst_5 = arith.constant 1.000000e+00 : f32
    %18 = vector.broadcast %cst_5 : f32 to vector<1x256xf32>
    %19 = arith.subf %18, %15 : vector<1x256xf32>
    %20 = arith.mulf %14, %14 : vector<1x256xf32>
    %21 = arith.mulf %15, %15 : vector<1x256xf32>
    %22 = arith.mulf %17, %17 : vector<1x256xf32>
    %23 = arith.mulf %19, %19 : vector<1x256xf32>
    %24 = arith.addf %20, %21 : vector<1x256xf32>
    %25 = math.sqrt %24 : vector<1x256xf32>
    %cst_6 = arith.constant 1.420000e+00 : f32
    %26 = vector.broadcast %cst_6 : f32 to vector<1x256xf32>
    %27 = arith.subf %26, %25 : vector<1x256xf32>
    %28 = arith.addf %20, %23 : vector<1x256xf32>
    %29 = math.sqrt %28 : vector<1x256xf32>
    %cst_7 = arith.constant 1.420000e+00 : f32
    %30 = vector.broadcast %cst_7 : f32 to vector<1x256xf32>
    %31 = arith.subf %30, %29 : vector<1x256xf32>
    %32 = arith.addf %22, %21 : vector<1x256xf32>
    %33 = math.sqrt %32 : vector<1x256xf32>
    %cst_8 = arith.constant 1.420000e+00 : f32
    %34 = vector.broadcast %cst_8 : f32 to vector<1x256xf32>
    %35 = arith.subf %34, %33 : vector<1x256xf32>
    %36 = arith.addf %22, %23 : vector<1x256xf32>
    %37 = math.sqrt %36 : vector<1x256xf32>
    %cst_9 = arith.constant 1.420000e+00 : f32
    %38 = vector.broadcast %cst_9 : f32 to vector<1x256xf32>
    %39 = arith.subf %38, %37 : vector<1x256xf32>
    %40 = arith.addf %27, %31 : vector<1x256xf32>
    %41 = arith.addf %35, %39 : vector<1x256xf32>
    %42 = arith.addf %40, %41 : vector<1x256xf32>
    %cst_10 = arith.constant 9.99999996E-13 : f32
    %43 = vector.broadcast %cst_10 : f32 to vector<1x256xf32>
    %44 = arith.maximumf %42, %43 : vector<1x256xf32>
    %45 = tpu.reciprocal %44 {approx = true} : vector<1x256xf32> -> vector<1x256xf32>
    %46 = arith.fptosi %12 : vector<1x256xf32> to vector<1x256xi32>
    %c127_i32 = arith.constant 127 : i32
    %47 = vector.broadcast %c127_i32 : i32 to vector<1x256xi32>
    %48 = arith.andi %46, %47 : vector<1x256xi32>
    %49 = vector.broadcast %48 : vector<1x256xi32> to vector<128x256xi32>
    %50 = arith.cmpi eq, %7, %49 : vector<128x256xi32>
    %51 = arith.addf %27, %31 : vector<1x256xf32>
    %52 = arith.mulf %51, %45 : vector<1x256xf32>
    %cst_11 = arith.constant 0.000000e+00 : f32
    %53 = vector.shape_cast %52 : vector<1x256xf32> to vector<1x256xf32>
    %54 = vector.broadcast %53 : vector<1x256xf32> to vector<128x256xf32>
    %55 = vector.broadcast %cst_11 : f32 to vector<128x256xf32>
    %56 = arith.select %50, %54, %55 : vector<128x256xi1>, vector<128x256xf32>
    %57 = arith.addf %35, %39 : vector<1x256xf32>
    %58 = arith.mulf %57, %45 : vector<1x256xf32>
    %cst_12 = arith.constant 0.000000e+00 : f32
    %59 = vector.shape_cast %58 : vector<1x256xf32> to vector<1x256xf32>
    %60 = vector.broadcast %59 : vector<1x256xf32> to vector<128x256xf32>
    %61 = vector.broadcast %cst_12 : f32 to vector<128x256xf32>
    %62 = arith.select %50, %60, %61 : vector<128x256xi1>, vector<128x256xf32>
    %c1_i32 = arith.constant 1 : i32
    %63 = tpu.dynamic_rotate %62 by %c1_i32 dim 0 : vector<128x256xf32>, i32 -> vector<128x256xf32>
    %64 = arith.addf %56, %63 : vector<128x256xf32>
    %c0_13 = arith.constant 0 : index
    %c0_14 = arith.constant 0 : index
    %65 = vector.load %arg2[%c0_13, %c0_14] : memref<32x512xbf16, #tpu.memory_space<vmem>>, vector<32x128xbf16>
    %66 = arith.truncf %64 : vector<128x256xf32> to vector<128x256xbf16>
    %cst_15 = arith.constant dense<0.000000e+00> : vector<32x256xf32>
    %67 = tpu.matmul %65, %66, %cst_15 {dimension_numbers = #tpu.dot_dimension_numbers<[1], [0], [0], [1], [0, 0, 1, 1], [], []>} : vector<32x128xbf16>, vector<128x256xbf16>, vector<32x256xf32> -> vector<32x256xf32>
    %cst_16 = arith.constant 1.510000e+02 : f32
    %68 = vector.broadcast %cst_16 : f32 to vector<1x256xf32>
    %69 = arith.mulf %5, %68 : vector<1x256xf32>
    %cst_17 = arith.constant 1.510000e+02 : f32
    %70 = vector.broadcast %cst_17 : f32 to vector<1x256xf32>
    %71 = arith.mulf %6, %70 : vector<1x256xf32>
    %72 = math.floor %69 : vector<1x256xf32>
    %73 = math.floor %71 : vector<1x256xf32>
    %74 = arith.subf %69, %72 : vector<1x256xf32>
    %75 = arith.subf %71, %73 : vector<1x256xf32>
    %cst_18 = arith.constant 1.000000e+00 : f32
    %76 = vector.broadcast %cst_18 : f32 to vector<1x256xf32>
    %77 = arith.subf %76, %74 : vector<1x256xf32>
    %cst_19 = arith.constant 1.000000e+00 : f32
    %78 = vector.broadcast %cst_19 : f32 to vector<1x256xf32>
    %79 = arith.subf %78, %75 : vector<1x256xf32>
    %80 = arith.mulf %74, %74 : vector<1x256xf32>
    %81 = arith.mulf %75, %75 : vector<1x256xf32>
    %82 = arith.mulf %77, %77 : vector<1x256xf32>
    %83 = arith.mulf %79, %79 : vector<1x256xf32>
    %84 = arith.addf %80, %81 : vector<1x256xf32>
    %85 = math.sqrt %84 : vector<1x256xf32>
    %cst_20 = arith.constant 1.420000e+00 : f32
    %86 = vector.broadcast %cst_20 : f32 to vector<1x256xf32>
    %87 = arith.subf %86, %85 : vector<1x256xf32>
    %88 = arith.addf %80, %83 : vector<1x256xf32>
    %89 = math.sqrt %88 : vector<1x256xf32>
    %cst_21 = arith.constant 1.420000e+00 : f32
    %90 = vector.broadcast %cst_21 : f32 to vector<1x256xf32>
    %91 = arith.subf %90, %89 : vector<1x256xf32>
    %92 = arith.addf %82, %81 : vector<1x256xf32>
    %93 = math.sqrt %92 : vector<1x256xf32>
    %cst_22 = arith.constant 1.420000e+00 : f32
    %94 = vector.broadcast %cst_22 : f32 to vector<1x256xf32>
    %95 = arith.subf %94, %93 : vector<1x256xf32>
    %96 = arith.addf %82, %83 : vector<1x256xf32>
    %97 = math.sqrt %96 : vector<1x256xf32>
    %cst_23 = arith.constant 1.420000e+00 : f32
    %98 = vector.broadcast %cst_23 : f32 to vector<1x256xf32>
    %99 = arith.subf %98, %97 : vector<1x256xf32>
    %100 = arith.addf %87, %91 : vector<1x256xf32>
    %101 = arith.addf %95, %99 : vector<1x256xf32>
    %102 = arith.addf %100, %101 : vector<1x256xf32>
    %cst_24 = arith.constant 9.99999996E-13 : f32
    %103 = vector.broadcast %cst_24 : f32 to vector<1x256xf32>
    %104 = arith.maximumf %102, %103 : vector<1x256xf32>
    %105 = tpu.reciprocal %104 {approx = true} : vector<1x256xf32> -> vector<1x256xf32>
    %106 = arith.fptosi %72 : vector<1x256xf32> to vector<1x256xi32>
    %c127_i32_25 = arith.constant 127 : i32
    %107 = vector.broadcast %c127_i32_25 : i32 to vector<1x256xi32>
    %108 = arith.andi %106, %107 : vector<1x256xi32>
    %109 = vector.broadcast %108 : vector<1x256xi32> to vector<128x256xi32>
    %110 = arith.cmpi eq, %7, %109 : vector<128x256xi32>
    %111 = arith.addf %87, %91 : vector<1x256xf32>
    %112 = arith.mulf %111, %105 : vector<1x256xf32>
    %cst_26 = arith.constant 0.000000e+00 : f32
    %113 = vector.shape_cast %112 : vector<1x256xf32> to vector<1x256xf32>
    %114 = vector.broadcast %113 : vector<1x256xf32> to vector<128x256xf32>
    %115 = vector.broadcast %cst_26 : f32 to vector<128x256xf32>
    %116 = arith.select %110, %114, %115 : vector<128x256xi1>, vector<128x256xf32>
    %117 = arith.addf %95, %99 : vector<1x256xf32>
    %118 = arith.mulf %117, %105 : vector<1x256xf32>
    %cst_27 = arith.constant 0.000000e+00 : f32
    %119 = vector.shape_cast %118 : vector<1x256xf32> to vector<1x256xf32>
    %120 = vector.broadcast %119 : vector<1x256xf32> to vector<128x256xf32>
    %121 = vector.broadcast %cst_27 : f32 to vector<128x256xf32>
    %122 = arith.select %110, %120, %121 : vector<128x256xi1>, vector<128x256xf32>
    %c1_i32_28 = arith.constant 1 : i32
    %123 = tpu.dynamic_rotate %122 by %c1_i32_28 dim 0 : vector<128x256xf32>, i32 -> vector<128x256xf32>
    %124 = arith.addf %116, %123 : vector<128x256xf32>
    %c0_29 = arith.constant 0 : index
    %c128 = arith.constant 128 : index
    %125 = vector.load %arg2[%c0_29, %c128] : memref<32x512xbf16, #tpu.memory_space<vmem>>, vector<32x128xbf16>
    %126 = arith.truncf %124 : vector<128x256xf32> to vector<128x256xbf16>
    %cst_30 = arith.constant dense<0.000000e+00> : vector<32x256xf32>
    %127 = tpu.matmul %125, %126, %cst_30 {dimension_numbers = #tpu.dot_dimension_numbers<[1], [0], [0], [1], [0, 0, 1, 1], [], []>} : vector<32x128xbf16>, vector<128x256xbf16>, vector<32x256xf32> -> vector<32x256xf32>
    %128 = arith.addf %67, %127 : vector<32x256xf32>
    %cst_31 = arith.constant 1.960000e+02 : f32
    %129 = vector.broadcast %cst_31 : f32 to vector<1x256xf32>
    %130 = arith.mulf %5, %129 : vector<1x256xf32>
    %cst_32 = arith.constant 1.960000e+02 : f32
    %131 = vector.broadcast %cst_32 : f32 to vector<1x256xf32>
    %132 = arith.mulf %6, %131 : vector<1x256xf32>
    %133 = math.floor %130 : vector<1x256xf32>
    %134 = math.floor %132 : vector<1x256xf32>
    %135 = arith.subf %130, %133 : vector<1x256xf32>
    %136 = arith.subf %132, %134 : vector<1x256xf32>
    %cst_33 = arith.constant 1.000000e+00 : f32
    %137 = vector.broadcast %cst_33 : f32 to vector<1x256xf32>
    %138 = arith.subf %137, %135 : vector<1x256xf32>
    %cst_34 = arith.constant 1.000000e+00 : f32
    %139 = vector.broadcast %cst_34 : f32 to vector<1x256xf32>
    %140 = arith.subf %139, %136 : vector<1x256xf32>
    %141 = arith.mulf %135, %135 : vector<1x256xf32>
    %142 = arith.mulf %136, %136 : vector<1x256xf32>
    %143 = arith.mulf %138, %138 : vector<1x256xf32>
    %144 = arith.mulf %140, %140 : vector<1x256xf32>
    %145 = arith.addf %141, %142 : vector<1x256xf32>
    %146 = math.sqrt %145 : vector<1x256xf32>
    %cst_35 = arith.constant 1.420000e+00 : f32
    %147 = vector.broadcast %cst_35 : f32 to vector<1x256xf32>
    %148 = arith.subf %147, %146 : vector<1x256xf32>
    %149 = arith.addf %141, %144 : vector<1x256xf32>
    %150 = math.sqrt %149 : vector<1x256xf32>
    %cst_36 = arith.constant 1.420000e+00 : f32
    %151 = vector.broadcast %cst_36 : f32 to vector<1x256xf32>
    %152 = arith.subf %151, %150 : vector<1x256xf32>
    %153 = arith.addf %143, %142 : vector<1x256xf32>
    %154 = math.sqrt %153 : vector<1x256xf32>
    %cst_37 = arith.constant 1.420000e+00 : f32
    %155 = vector.broadcast %cst_37 : f32 to vector<1x256xf32>
    %156 = arith.subf %155, %154 : vector<1x256xf32>
    %157 = arith.addf %143, %144 : vector<1x256xf32>
    %158 = math.sqrt %157 : vector<1x256xf32>
    %cst_38 = arith.constant 1.420000e+00 : f32
    %159 = vector.broadcast %cst_38 : f32 to vector<1x256xf32>
    %160 = arith.subf %159, %158 : vector<1x256xf32>
    %161 = arith.addf %148, %152 : vector<1x256xf32>
    %162 = arith.addf %156, %160 : vector<1x256xf32>
    %163 = arith.addf %161, %162 : vector<1x256xf32>
    %cst_39 = arith.constant 9.99999996E-13 : f32
    %164 = vector.broadcast %cst_39 : f32 to vector<1x256xf32>
    %165 = arith.maximumf %163, %164 : vector<1x256xf32>
    %166 = tpu.reciprocal %165 {approx = true} : vector<1x256xf32> -> vector<1x256xf32>
    %167 = arith.fptosi %133 : vector<1x256xf32> to vector<1x256xi32>
    %c127_i32_40 = arith.constant 127 : i32
    %168 = vector.broadcast %c127_i32_40 : i32 to vector<1x256xi32>
    %169 = arith.andi %167, %168 : vector<1x256xi32>
    %170 = vector.broadcast %169 : vector<1x256xi32> to vector<128x256xi32>
    %171 = arith.cmpi eq, %7, %170 : vector<128x256xi32>
    %172 = arith.addf %148, %152 : vector<1x256xf32>
    %173 = arith.mulf %172, %166 : vector<1x256xf32>
    %cst_41 = arith.constant 0.000000e+00 : f32
    %174 = vector.shape_cast %173 : vector<1x256xf32> to vector<1x256xf32>
    %175 = vector.broadcast %174 : vector<1x256xf32> to vector<128x256xf32>
    %176 = vector.broadcast %cst_41 : f32 to vector<128x256xf32>
    %177 = arith.select %171, %175, %176 : vector<128x256xi1>, vector<128x256xf32>
    %178 = arith.addf %156, %160 : vector<1x256xf32>
    %179 = arith.mulf %178, %166 : vector<1x256xf32>
    %cst_42 = arith.constant 0.000000e+00 : f32
    %180 = vector.shape_cast %179 : vector<1x256xf32> to vector<1x256xf32>
    %181 = vector.broadcast %180 : vector<1x256xf32> to vector<128x256xf32>
    %182 = vector.broadcast %cst_42 : f32 to vector<128x256xf32>
    %183 = arith.select %171, %181, %182 : vector<128x256xi1>, vector<128x256xf32>
    %c1_i32_43 = arith.constant 1 : i32
    %184 = tpu.dynamic_rotate %183 by %c1_i32_43 dim 0 : vector<128x256xf32>, i32 -> vector<128x256xf32>
    %185 = arith.addf %177, %184 : vector<128x256xf32>
    %c0_44 = arith.constant 0 : index
    %c256 = arith.constant 256 : index
    %186 = vector.load %arg2[%c0_44, %c256] : memref<32x512xbf16, #tpu.memory_space<vmem>>, vector<32x128xbf16>
    %187 = arith.truncf %185 : vector<128x256xf32> to vector<128x256xbf16>
    %cst_45 = arith.constant dense<0.000000e+00> : vector<32x256xf32>
    %188 = tpu.matmul %186, %187, %cst_45 {dimension_numbers = #tpu.dot_dimension_numbers<[1], [0], [0], [1], [0, 0, 1, 1], [], []>} : vector<32x128xbf16>, vector<128x256xbf16>, vector<32x256xf32> -> vector<32x256xf32>
    %189 = arith.addf %128, %188 : vector<32x256xf32>
    %cst_46 = arith.constant 2.560000e+02 : f32
    %190 = vector.broadcast %cst_46 : f32 to vector<1x256xf32>
    %191 = arith.mulf %5, %190 : vector<1x256xf32>
    %cst_47 = arith.constant 2.560000e+02 : f32
    %192 = vector.broadcast %cst_47 : f32 to vector<1x256xf32>
    %193 = arith.mulf %6, %192 : vector<1x256xf32>
    %194 = math.floor %191 : vector<1x256xf32>
    %195 = math.floor %193 : vector<1x256xf32>
    %196 = arith.subf %191, %194 : vector<1x256xf32>
    %197 = arith.subf %193, %195 : vector<1x256xf32>
    %cst_48 = arith.constant 1.000000e+00 : f32
    %198 = vector.broadcast %cst_48 : f32 to vector<1x256xf32>
    %199 = arith.subf %198, %196 : vector<1x256xf32>
    %cst_49 = arith.constant 1.000000e+00 : f32
    %200 = vector.broadcast %cst_49 : f32 to vector<1x256xf32>
    %201 = arith.subf %200, %197 : vector<1x256xf32>
    %202 = arith.mulf %196, %196 : vector<1x256xf32>
    %203 = arith.mulf %197, %197 : vector<1x256xf32>
    %204 = arith.mulf %199, %199 : vector<1x256xf32>
    %205 = arith.mulf %201, %201 : vector<1x256xf32>
    %206 = arith.addf %202, %203 : vector<1x256xf32>
    %207 = math.sqrt %206 : vector<1x256xf32>
    %cst_50 = arith.constant 1.420000e+00 : f32
    %208 = vector.broadcast %cst_50 : f32 to vector<1x256xf32>
    %209 = arith.subf %208, %207 : vector<1x256xf32>
    %210 = arith.addf %202, %205 : vector<1x256xf32>
    %211 = math.sqrt %210 : vector<1x256xf32>
    %cst_51 = arith.constant 1.420000e+00 : f32
    %212 = vector.broadcast %cst_51 : f32 to vector<1x256xf32>
    %213 = arith.subf %212, %211 : vector<1x256xf32>
    %214 = arith.addf %204, %203 : vector<1x256xf32>
    %215 = math.sqrt %214 : vector<1x256xf32>
    %cst_52 = arith.constant 1.420000e+00 : f32
    %216 = vector.broadcast %cst_52 : f32 to vector<1x256xf32>
    %217 = arith.subf %216, %215 : vector<1x256xf32>
    %218 = arith.addf %204, %205 : vector<1x256xf32>
    %219 = math.sqrt %218 : vector<1x256xf32>
    %cst_53 = arith.constant 1.420000e+00 : f32
    %220 = vector.broadcast %cst_53 : f32 to vector<1x256xf32>
    %221 = arith.subf %220, %219 : vector<1x256xf32>
    %222 = arith.addf %209, %213 : vector<1x256xf32>
    %223 = arith.addf %217, %221 : vector<1x256xf32>
    %224 = arith.addf %222, %223 : vector<1x256xf32>
    %cst_54 = arith.constant 9.99999996E-13 : f32
    %225 = vector.broadcast %cst_54 : f32 to vector<1x256xf32>
    %226 = arith.maximumf %224, %225 : vector<1x256xf32>
    %227 = tpu.reciprocal %226 {approx = true} : vector<1x256xf32> -> vector<1x256xf32>
    %228 = arith.fptosi %194 : vector<1x256xf32> to vector<1x256xi32>
    %c127_i32_55 = arith.constant 127 : i32
    %229 = vector.broadcast %c127_i32_55 : i32 to vector<1x256xi32>
    %230 = arith.andi %228, %229 : vector<1x256xi32>
    %231 = vector.broadcast %230 : vector<1x256xi32> to vector<128x256xi32>
    %232 = arith.cmpi eq, %7, %231 : vector<128x256xi32>
    %233 = arith.addf %209, %213 : vector<1x256xf32>
    %234 = arith.mulf %233, %227 : vector<1x256xf32>
    %cst_56 = arith.constant 0.000000e+00 : f32
    %235 = vector.shape_cast %234 : vector<1x256xf32> to vector<1x256xf32>
    %236 = vector.broadcast %235 : vector<1x256xf32> to vector<128x256xf32>
    %237 = vector.broadcast %cst_56 : f32 to vector<128x256xf32>
    %238 = arith.select %232, %236, %237 : vector<128x256xi1>, vector<128x256xf32>
    %239 = arith.addf %217, %221 : vector<1x256xf32>
    %240 = arith.mulf %239, %227 : vector<1x256xf32>
    %cst_57 = arith.constant 0.000000e+00 : f32
    %241 = vector.shape_cast %240 : vector<1x256xf32> to vector<1x256xf32>
    %242 = vector.broadcast %241 : vector<1x256xf32> to vector<128x256xf32>
    %243 = vector.broadcast %cst_57 : f32 to vector<128x256xf32>
    %244 = arith.select %232, %242, %243 : vector<128x256xi1>, vector<128x256xf32>
    %c1_i32_58 = arith.constant 1 : i32
    %245 = tpu.dynamic_rotate %244 by %c1_i32_58 dim 0 : vector<128x256xf32>, i32 -> vector<128x256xf32>
    %246 = arith.addf %238, %245 : vector<128x256xf32>
    %c0_59 = arith.constant 0 : index
    %c384 = arith.constant 384 : index
    %247 = vector.load %arg2[%c0_59, %c384] : memref<32x512xbf16, #tpu.memory_space<vmem>>, vector<32x128xbf16>
    %248 = arith.truncf %246 : vector<128x256xf32> to vector<128x256xbf16>
    %cst_60 = arith.constant dense<0.000000e+00> : vector<32x256xf32>
    %249 = tpu.matmul %247, %248, %cst_60 {dimension_numbers = #tpu.dot_dimension_numbers<[1], [0], [0], [1], [0, 0, 1, 1], [], []>} : vector<32x128xbf16>, vector<128x256xbf16>, vector<32x256xf32> -> vector<32x256xf32>
    %250 = arith.addf %189, %249 : vector<32x256xf32>
    %c0_61 = arith.constant 0 : index
    %c0_62 = arith.constant 0 : index
    %251 = vector.load %arg3[%c0_61, %c0_62] : memref<32x1xf32, #tpu.memory_space<vmem>>, vector<32x1xf32>
    %252 = vector.broadcast %251 : vector<32x1xf32> to vector<32x256xf32>
    %253 = arith.addf %250, %252 : vector<32x256xf32>
    %cst_63 = arith.constant 0.00999999977 : f32
    %254 = vector.broadcast %cst_63 : f32 to vector<32x256xf32>
    %255 = arith.mulf %254, %253 : vector<32x256xf32>
    %256 = arith.maximumf %253, %255 : vector<32x256xf32>
    %c0_64 = arith.constant 0 : index
    %c0_65 = arith.constant 0 : index
    %257 = vector.load %arg4[%c0_64, %c0_65] : memref<32x32xbf16, #tpu.memory_space<vmem>>, vector<32x32xbf16>
    %258 = arith.truncf %256 : vector<32x256xf32> to vector<32x256xbf16>
    %cst_66 = arith.constant dense<0.000000e+00> : vector<32x256xf32>
    %259 = tpu.matmul %257, %258, %cst_66 {dimension_numbers = #tpu.dot_dimension_numbers<[1], [0], [0], [1], [0, 0, 1, 1], [], []>} : vector<32x32xbf16>, vector<32x256xbf16>, vector<32x256xf32> -> vector<32x256xf32>
    %c0_67 = arith.constant 0 : index
    %c0_68 = arith.constant 0 : index
    %260 = vector.load %arg5[%c0_67, %c0_68] : memref<32x1xf32, #tpu.memory_space<vmem>>, vector<32x1xf32>
    %261 = vector.broadcast %260 : vector<32x1xf32> to vector<32x256xf32>
    %262 = arith.addf %259, %261 : vector<32x256xf32>
    %cst_69 = arith.constant 0.00999999977 : f32
    %263 = vector.broadcast %cst_69 : f32 to vector<32x256xf32>
    %264 = arith.mulf %263, %262 : vector<32x256xf32>
    %265 = arith.maximumf %262, %264 : vector<32x256xf32>
    %c0_70 = arith.constant 0 : index
    %c0_71 = arith.constant 0 : index
    %266 = vector.load %arg6[%c0_70, %c0_71] : memref<4x32xf32, #tpu.memory_space<vmem>>, vector<4x32xf32>
    %cst_72 = arith.constant dense<0.000000e+00> : vector<4x256xf32>
    %267 = tpu.matmul %266, %265, %cst_72 {dimension_numbers = #tpu.dot_dimension_numbers<[1], [0], [0], [1], [0, 0, 1, 1], [], []>} : vector<4x32xf32>, vector<32x256xf32>, vector<4x256xf32> -> vector<4x256xf32>
    %c0_73 = arith.constant 0 : index
    %c0_74 = arith.constant 0 : index
    %268 = vector.load %arg7[%c0_73, %c0_74] : memref<4x1xf32, #tpu.memory_space<vmem>>, vector<4x1xf32>
    %269 = vector.broadcast %268 : vector<4x1xf32> to vector<4x256xf32>
    %270 = arith.addf %267, %269 : vector<4x256xf32>
    %cst_75 = arith.constant 0.00999999977 : f32
    %271 = vector.broadcast %cst_75 : f32 to vector<4x256xf32>
    %272 = arith.mulf %271, %270 : vector<4x256xf32>
    %273 = arith.maximumf %270, %272 : vector<4x256xf32>
    %c0_76 = arith.constant 0 : index
    %c0_77 = arith.constant 0 : index
    %274 = vector.load %arg8[%c0_76, %c0_77] : memref<4x1xf32, #tpu.memory_space<vmem>>, vector<4x1xf32>
    %275 = vector.broadcast %274 : vector<4x1xf32> to vector<4x256xf32>
    %276 = arith.mulf %273, %275 : vector<4x256xf32>
    %cst_78 = arith.constant dense<0.000000e+00> : vector<256xf32>
    %277 = vector.multi_reduction <add>, %276, %cst_78 [0] : vector<4x256xf32> to vector<256xf32>
    %278 = vector.shape_cast %277 : vector<256xf32> to vector<1x256xf32>
    %c0_79 = arith.constant 0 : index
    %c0_80 = arith.constant 0 : index
    %279 = vector.load %arg9[%c0_79, %c0_80] : memref<1x1xf32, #tpu.memory_space<vmem>>, vector<1x1xf32>
    %280 = vector.broadcast %279 : vector<1x1xf32> to vector<1x256xf32>
    %281 = arith.addf %278, %280 : vector<1x256xf32>
    %cst_81 = arith.constant 0.00999999977 : f32
    %282 = vector.broadcast %cst_81 : f32 to vector<1x256xf32>
    %283 = arith.mulf %282, %281 : vector<1x256xf32>
    %284 = arith.maximumf %281, %283 : vector<1x256xf32>
    %c0_82 = arith.constant 0 : index
    %c0_83 = arith.constant 0 : index
    %285 = vector.load %arg10[%c0_82, %c0_83] : memref<1x256xf32, #tpu.memory_space<vmem>>, vector<1x256xf32>
    tpu.vector_store %arg10[%c0_82, %c0_83], %284 {strides = array<i32>} : memref<1x256xf32, #tpu.memory_space<vmem>>, vector<1x256xf32>,
    return
  }
  func.func @transform_0(%arg0: i32) -> (i32, i32) {
    %c0_i32 = arith.constant 0 : i32
    %c0_i32_0 = arith.constant 0 : i32
    return %c0_i32, %arg0 : i32, i32
  }
  func.func @transform_1(%arg0: i32) -> (i32, i32) {
    %c0_i32 = arith.constant 0 : i32
    %c0_i32_0 = arith.constant 0 : i32
    %c0_i32_1 = arith.constant 0 : i32
    return %c0_i32, %c0_i32_0 : i32, i32
  }
  func.func @transform_2(%arg0: i32) -> (i32, i32) {
    %c0_i32 = arith.constant 0 : i32
    %c0_i32_0 = arith.constant 0 : i32
    %c0_i32_1 = arith.constant 0 : i32
    return %c0_i32, %c0_i32_0 : i32, i32
  }
  func.func @transform_3(%arg0: i32) -> (i32, i32) {
    %c0_i32 = arith.constant 0 : i32
    %c0_i32_0 = arith.constant 0 : i32
    %c0_i32_1 = arith.constant 0 : i32
    return %c0_i32, %c0_i32_0 : i32, i32
  }
  func.func @transform_4(%arg0: i32) -> (i32, i32) {
    %c0_i32 = arith.constant 0 : i32
    %c0_i32_0 = arith.constant 0 : i32
    %c0_i32_1 = arith.constant 0 : i32
    return %c0_i32, %c0_i32_0 : i32, i32
  }
  func.func @transform_5(%arg0: i32) -> (i32, i32) {
    %c0_i32 = arith.constant 0 : i32
    %c0_i32_0 = arith.constant 0 : i32
    %c0_i32_1 = arith.constant 0 : i32
    return %c0_i32, %c0_i32_0 : i32, i32
  }
  func.func @transform_6(%arg0: i32) -> (i32, i32) {
    %c0_i32 = arith.constant 0 : i32
    %c0_i32_0 = arith.constant 0 : i32
    %c0_i32_1 = arith.constant 0 : i32
    return %c0_i32, %c0_i32_0 : i32, i32
  }
  func.func @transform_7(%arg0: i32) -> (i32, i32) {
    %c0_i32 = arith.constant 0 : i32
    %c0_i32_0 = arith.constant 0 : i32
    %c0_i32_1 = arith.constant 0 : i32
    return %c0_i32, %c0_i32_0 : i32, i32
  }
  func.func @transform_8(%arg0: i32) -> (i32, i32) {
    %c0_i32 = arith.constant 0 : i32
    %c0_i32_0 = arith.constant 0 : i32
    %c0_i32_1 = arith.constant 0 : i32
    return %c0_i32, %c0_i32_0 : i32, i32
  }
  func.func @transform_9(%arg0: i32) -> (i32, i32) {
    %c0_i32 = arith.constant 0 : i32
    %c0_i32_0 = arith.constant 0 : i32
    return %c0_i32, %arg0 : i32, i32
  }
}

</mosaic_0001>

<bundles_post_ra>
// kernel: tpu_custom_call.1
= control target key start
LH: loop header
LB: loop body
LE: loop exit
PB: predicated region body
PF: predicated region fallthrough
CT: control target
= control target key end

     0   :  { %s5072_s0 = inlined_call_operand.hbm [shape: f32[2,1024], index: 0, kind: input, shape index: {}]   ;;  %s5073_s1 = inlined_call_operand.vmem [shape: bf16[32,512], index: 1, kind: input, shape index: {}]   ;;  %s5074_s2 = inlined_call_operand.vmem [shape: f32[32,1], index: 2, kind: input, shape index: {}]   ;;  %s5075_s3 = inlined_call_operand.hbm [shape: bf16[32,32], index: 3, kind: input, shape index: {}]   ;;  %s5076_s4 = inlined_call_operand.vmem [shape: f32[32,1], index: 4, kind: input, shape index: {}]   ;;  %s5077_s5 = inlined_call_operand.vmem [shape: f32[4,32], index: 5, kind: input, shape index: {}]   ;;  %s5078_s6 = inlined_call_operand.vmem [shape: f32[4,1], index: 6, kind: input, shape index: {}]   ;;  %s5079_s7 = inlined_call_operand.vmem [shape: f32[4,1], index: 7, kind: input, shape index: {}]   ;;  %s5080_s8 = inlined_call_operand.<no memory space> [shape: f32[1,1], index: 8, kind: input, shape index: {}]   ;;  %s5081_s9 = inlined_call_operand.hbm [shape: f32[1,1024], index: 9, kind: output, shape index: {}]  }
   0x1   :  { %v14_v0 = vstv %s5080_s8 }
   0x2   :  { %15 = vst [vmem:[#allocation2] sm:$0x1] %v14_v0 }
   0x3   :  { %16 = vsyncpa [#allocation4], 0 }
   0x4   :  { %18 = vsyncpa [#allocation4 + $0x1], 0 }
   0x5   :  { %19 = vsyncpa [#allocation7], 0 }
   0x6   :  { %20 = vsyncpa [#allocation5], 0 }
   0x7   :  { %22 = vsyncpa [#allocation5 + $0x1], 0  ;;  %s2754_s11 = smov 0   ;;  %s2756_s12 = smov 0  }
   0x8   :  { %s2758_s13 = smov 0   ;;  %s2760_s14 = smov 0  }
   0x9 LB: > { %s2775_s8 = sadd.s32 4294967295, %s2691_s14   ;;  %s2374_s15 = sadd.s32 4294967294, %s2691_s14   ;;  %s2691_s14 = sphi %s2760_s14, %s5133_s14   ;;  %s2687_s13 = sphi %s2758_s13, %s5136_s13   ;;  %s2683_s12 = sphi %s2756_s12, %s5135_s12   ;;  %s2679_s11 = sphi %s2754_s11, %s5134_s11  }
   0xa   : > { %p48_p0 = scmp.ne.s32.totalorder %s2683_s12, %s2679_s11  ;;  %p5082_p1 = scmp.eq.s32.totalorder %s2775_s8, 0 }
   0xb   : > { %p246_p3 = scmp.eq.s32.totalorder %s2374_s15, 3  ;;  %p2375_p5 = scmp.ge.s32.totalorder %s2691_s14, 1 }
   0xc   : > { %p2784_p4 = por %p5082_p1, %p48_p0  ;;  %p253_p7 = scmp.lt.s32.totalorder %s2691_s14, 5 }
   0xd   : > { %p2789_p6 = por %p246_p3, %p48_p0  ;;  %s2693_s19 = smov [#allocation6]  }
   0xe   : > { %s5104_s16 = scalar_select %p2784_p4, 1, 0 }
   0xf   : > { %s5105_s17 = scalar_select %p2789_p6, 1, 0 }
  0x10   : > { %p2794_p8 = pnand %p2375_p5, %p253_p7  ;;  %s271_s20 = sshll.u32 %s2693_s19, 4  ;;  %s272_s20 = int_to_ptr.vmem [resolvable:$true] %s271_s20 }
  0x11   : > { %s2807_s22 = sadd.s32 1, %s2691_s14   ;;  %s35_s23 = sadd.s32 1, %s2687_s13 }
  0x12   : > { %s5106_s18 = scalar_select %p2794_p8, 1, 0 }
  0x13   : > { %p2457_p9 = pneg %p2794_p8  ;;  %5108 = sst [smem:[#allocation12_spill]] %s2807_s22 }
  0x14   : > { %s32_s24 = ssub.s32 %s2691_s14, %s2807_s22  ;;  %s2563_s27 = scalar_lea.hbm %s5075_s3, 256 }
  0x15   : > { %p2802_p10 = pnand %p2457_p9, %p5082_p1  ;;  %p2564_p11 = scmp.ne.s32.totalorder %s5075_s3, %s2563_s27 }
  0x16   : > { %p2570_p3 = scmp.lt.u32.totalorder %s2563_s27, %s5075_s3 }
  0x17   : > { %p2565_p12 = pneg %p2802_p10 }
  0x19   : > { %p2566_p13 = pnand %p2565_p12, %p2564_p11 }
  0x1b   : > { %p2567_p0 = pneg %p2566_p13 }
  0x1d   : > { %p2572_p5 = pnand %p2570_p3, %p2567_p0 }
  0x1f   : > { %2575 = shalt.err (!%p2572_p5)
}
  0x20   : > { %s2576_s15 = scalar_lea.vmem %s272_s20, 256  ;;  %p2584_p2 = scmp.lt.s32.totalorder %s272_s20, %s272_s20 }
  0x21   : > { %p2577_p7 = scmp.ne.s32.totalorder %s272_s20, %s2576_s15  ;;  %p2585_p6 = scmp.lt.s32.totalorder %s2576_s15, %s2576_s15 }
  0x23   : > { %p2579_p9 = pnand %p2577_p7, %p2565_p12  ;;  %p2586_p4 = por %p2585_p6, %p2584_p2 }
  0x25   : > { %p2580_p1 = pneg %p2579_p9 }
  0x27   : > { %p2587_p8 = pnand %p2586_p4, %p2580_p1 }
  0x29   : > { %2590 = shalt.err (!%p2587_p8)
}
  0x2a   : > { %s2694_s19 = smov 64   ;;  %s2695_s25 = smov 4  }
  0x2b   : > { %2460 = dma.hbm_to_vmem [thread:$0]  (!%p2802_p10), %s5075_s3, 256, %s272_s20, [#allocation7], %s2694_s19, %s2694_s19, %s2695_s25  }
  0x2c   : > { %p33_p11 = scmp.eq.s32.totalorder %s32_s24, 0  ;;  %p42_p2 = scmp.ne.s32.totalorder %s2687_s13, %s2683_s12 }
  0x2d   : > { %p43_p1 = scmp.eq.s32.totalorder %s2691_s14, 0  ;;  %p2470_p4 = scmp.lt.s32.totalorder %s2691_s14, 4 }
  0x2e   : > { %s2833_s28 = scalar_select %p33_p11, %s2687_s13, %s35_s23  }
  0x2f   : > { %p44_p6 = por %p43_p1, %p42_p2  ;;  %p5109_p8 = scmp.eq.s32.totalorder %s2775_s8, 3 }
  0x30   : > { %s300_s30 = sand.u32 1, %s2687_s13   ;;  %s2403_s10 = sshll.u32 %s2691_s14, 6 }
  0x31   : > { %p2837_p12 = por %p5109_p8, %p42_p2  ;;  %s2378_s15 = sshll.u32 %s300_s30, 2 }
  0x32   : > { %s2846_s26 = scalar_lea.hbm %s5072_s0, %s2403_s10  ;;  %s304_s20 = scalar_lea.vmem [#allocation3], %s2378_s15 }
  0x33   : > { %s312_s23 = sshll.u32 %s304_s20, 4  ;;  %p2848_p10 = pnand %p2470_p4, %p44_p6  ;;  %s2852_s23 = int_to_ptr.vmem [resolvable:$true] %s312_s23 }
  0x34   : > { %s301_s19 = scalar_lea.sflag [#allocation4], %s300_s30  ;;  %s2591_s25 = scalar_lea.hbm %s2846_s26, 64 }
  0x35   : > { %p2592_p13 = scmp.ne.s32.totalorder %s2846_s26, %s2591_s25  ;;  %p2593_p0 = pneg %p2848_p10 }
  0x36   : > { %s2596_s10 = scalar_lea.hbm %s5072_s0, 256  ;;  %p2597_p7 = scmp.lt.u32.totalorder %s2846_s26, %s5072_s0 }
  0x37   : > { %p2594_p3 = pnand %p2593_p0, %p2592_p13  ;;  %p2598_p9 = scmp.lt.u32.totalorder %s2596_s10, %s2591_s25 }
  0x38   : > { %p2600_p2 = scmp.lt.u32.totalorder %s2591_s25, %s2846_s26 }
  0x39   : > { %p2595_p5 = pneg %p2594_p3  ;;  %p2599_p11 = por %p2598_p9, %p2597_p7 }
  0x3b   : > { %p2601_p1 = por %p2600_p2, %p2599_p11 }
  0x3d   : > { %p2602_p4 = pnand %p2601_p1, %p2595_p5 }
  0x3f   : > { %2605 = shalt.err (!%p2602_p4)
}
  0x40   : > { %s2606_s30 = scalar_lea.vmem %s2852_s23, 64  ;;  %s2696_s20 = smov [#allocation3]  }
  0x41   : > { %p2607_p6 = scmp.ne.s32.totalorder %s2852_s23, %s2606_s30  ;;  %s2611_s22 = sshll.u32 %s2696_s20, 4  ;;  %s2612_s22 = int_to_ptr.vmem [resolvable:$false] %s2611_s22 }
  0x42   : > { %s2613_s27 = scalar_lea.vmem %s2612_s22, 128  ;;  %p2614_p3 = scmp.lt.s32.totalorder %s2852_s23, %s2612_s22 }
  0x43   : > { %p2609_p8 = pnand %p2607_p6, %p2593_p0  ;;  %p2615_p7 = scmp.lt.s32.totalorder %s2613_s27, %s2606_s30 }
  0x45   : > { %p2610_p13 = pneg %p2609_p8  ;;  %p2616_p9 = por %p2615_p7, %p2614_p3 }
  0x47   : > { %p2617_p11 = pnand %p2616_p9, %p2610_p13 }
  0x49   : > { %2620 = shalt.err (!%p2617_p11)
}
  0x4a   : > { %2464 = dma.hbm_to_vmem [thread:$0]  (!%p2848_p10), %s2846_s26, 64, %s2852_s23, %s301_s19  }
  0x4b   : > { %p5112_p5 = scmp.ne.s32.totalorder %s5106_s18, 0 }
  0x4d   : > { %321 = sbr.rel (%p5112_p5) target bundleno = 1137 (0x471), region = 56 }
  0x54   : > { %s2882_s25 = sand.u32 1, %s2683_s12   ;;  %p5113_p0 = scmp.ne.s32.totalorder %s5104_s16, 0 }
  0x55   : > { %s2382_s10 = sshll.u32 %s2882_s25, 2  ;;  %s324_s15 = scalar_lea.sflag [#allocation4], %s2882_s25 }
  0x56   : > { %s327_s21 = scalar_lea.vmem [#allocation3], %s2382_s10 }
  0x57   : > { %2666 = dma.done.wait (%p5113_p0), %s324_s15, 64  }
  0x58   : > { %2668 = vsyncadd (%p5113_p0), %s324_s15, 4294967232  ;;  %p5114_p2 = scmp.eq.s32.totalorder %s2775_s8, 0 }
  0x5a   : > { %2670 = dma.done.wait (%p5114_p2), [#allocation7], 256   ;;  %p5115_p10 = pmov %p5114_p2 }
  0x5b   : > { %v369_v1 = vld [vmem:[%s327_s21] sm:$0xf]  ;;  %v5087_v30 = vlaneseq  ;;  %s2384_s21 = sshll.u32 %s2882_s25, 1  ;;  %s2404_s16 = sshll.u32 %s2775_s8, 5 }
  0x5c   : > { %2672 = vsyncadd (%p5115_p10), [#allocation7], 4294967040  ;;  %v370_v2 = vmul.f32 0.5, %v369_v1  ;;  %s365_s18 = scalar_lea.vmem [#allocation8], %s2384_s21  ;;  %s5029_s19 = scalar_lea.hbm %s5081_s9, %s2404_s16 }
  0x5d   : > { %v2913_v33 = vshrl.u32 %v5087_v30, 7  ;;  %s2294_s26 = sshll.u32 %s365_s18, 4  ;;  %s2280_s30 = scalar_lea.sflag [#allocation5], %s2882_s25  ;;  %s5031_s26 = int_to_ptr.vmem [resolvable:$true] %s2294_s26 }
  0x5e   : > { %v2894_v3 = vadd.f32 0.5, %v370_v2  ;;  %s2621_s20 = scalar_lea.vmem %s5031_s26, 32  ;;  %s2700_s8 = smov [#allocation8]  }
  0x5f   : > { %p2622_p1 = scmp.ne.s32.totalorder %s5031_s26, %s2621_s20  ;;  %s2625_s22 = sshll.u32 %s2700_s8, 4  ;;  %s2626_s22 = int_to_ptr.vmem [resolvable:$false] %s2625_s22 }
  0x60   : > { %v715_v4 = vmul.f32 151.0, %v2894_v3  ;;  %v1170_v5 = vmul.f32 196.0, %v2894_v3  ;;  %v2905_v31 = vmul.f32 116.0, %v2894_v3  ;;  %s2627_s27 = scalar_lea.vmem %s2626_s22, 64  ;;  %p2628_p8 = scmp.lt.s32.totalorder %s5031_s26, %s2626_s22 }
  0x61   : > { %p2623_p4 = pnand %p2622_p1, %p2837_p12  ;;  %p2629_p13 = scmp.lt.s32.totalorder %s2627_s27, %s2621_s20 }
  0x62   : > { %v716_v6 = vfloor.f32 %v715_v4  ;;  %v1171_v7 = vfloor.f32 %v1170_v5  ;;  %v5088_v36 = vfloor.f32 %v2905_v31 }
  0x63   : > { %p2624_p6 = pneg %p2623_p4  ;;  %p2630_p3 = por %p2629_p13, %p2628_p8 }
  0x64   : > { %v717_v8 = vsub.f32 %v715_v4, %v716_v6  ;;  %v1172_v9 = vsub.f32 %v1170_v5, %v1171_v7  ;;  %v2915_v34 = vtrunc.f32 %v716_v6  ;;  %v2921_v37 = vtrunc.f32 %v1171_v7 }
  0x65   : > { %p2631_p7 = pnand %p2630_p3, %p2624_p6 }
  0x66   : > { %v718_v10 = vsub.f32 1.0, %v717_v8  ;;  %v719_v11 = vmul.f32 %v717_v8, %v717_v8  ;;  %v1173_v12 = vsub.f32 1.0, %v1172_v9  ;;  %v1174_v13 = vmul.f32 %v1172_v9, %v1172_v9 }
  0x68   : > { %v720_v14 = vmul.f32 %v718_v10, %v718_v10  ;;  %v722_v15 = vrot.slane %v719_v11, 7  ;;  %v1175_v16 = vmul.f32 %v1173_v12, %v1173_v12  ;;  %v1177_v17 = vrot.slane %v1174_v13, 7 }
  0x6a   : > { %v723_v18 = vrot.slane %v722_v15, 2  ;;  %v735_v19 = vrot.slane %v720_v14, 7  ;;  %v1178_v20 = vrot.slane %v1177_v17, 2  ;;  %v1190_v24 = vrot.slane %v1175_v16, 7 }
  0x6b   : > { %v2444_v17 = vcvt.f32.s32 %v2915_v34 }
  0x6c   : > { %v725_v21 = vadd.f32 %v723_v18, %v719_v11  ;;  %v736_v22 = vrot.slane %v735_v19, 2  ;;  %v747_v23 = vadd.f32 %v723_v18, %v720_v14  ;;  %v2898_v26 = vadd.f32 %v1178_v20, %v1174_v13 }
  0x6d   : > { %v1191_v28 = vrot.slane %v1190_v24, 2  ;;  %v2902_v29 = vadd.f32 %v1178_v20, %v1175_v16  ;;  %v771_v34 = vand.u32 127, %v2444_v17  ;;  %v3090_v17 = vmul.f32 256.0, %v2894_v3 }
  0x6e   : > { %2523 = vrsqrt.f32 %v725_v21  ;;  %v738_v25 = vadd.f32 %v736_v22, %v719_v11  ;;  %v2900_v27 = vadd.f32 %v736_v22, %v720_v14  ;;  %vm728_vm0 = vcmp.eq.f32.partialorder %v725_v21, inf }
  0x6f   : > { %2525 = vrsqrt.f32 %v747_v23  ;;  %v2909_v32 = vadd.f32 %v1191_v28, %v1174_v13  ;;  %v2917_v35 = vadd.f32 %v1191_v28, %v1175_v16  ;;  %vm730_vm1 = vcmp.eq.f32.partialorder %v725_v21, 0.0 }
  0x70   : > { %2527 = vrsqrt.f32 %v738_v25  ;;  %v731_v38 = vand.u32 2147483648, %v725_v21  ;;  %vm750_vm2 = vcmp.eq.f32.partialorder %v747_v23, inf  ;;  %vm752_vm3 = vcmp.eq.f32.partialorder %v747_v23, 0.0 }
  0x71   : > { %2529 = vrsqrt.f32 %v2900_v27  ;;  %vm741_vm4 = vcmp.eq.f32.partialorder %v738_v25, inf  ;;  %vm743_vm5 = vcmp.eq.f32.partialorder %v738_v25, 0.0  ;;  %v744_v40 = vand.u32 2147483648, %v738_v25 }
  0x72   : > { %2531 = vrsqrt.f32 %v2898_v26  ;;  %v753_v41 = vand.u32 2147483648, %v747_v23  ;;  %vm759_vm6 = vcmp.eq.f32.partialorder %v2900_v27, inf  ;;  %vm761_vm7 = vcmp.eq.f32.partialorder %v2900_v27, 0.0 }
  0x73   : > { %2533 = vrsqrt.f32 %v2902_v29  ;;  %v762_v44 = vand.u32 2147483648, %v2900_v27  ;;  %vm1183_vm8 = vcmp.eq.f32.partialorder %v2898_v26, inf  ;;  %vm1185_vm9 = vcmp.eq.f32.partialorder %v2898_v26, 0.0 }
  0x74   : > { %2535 = vrsqrt.f32 %v2909_v32  ;;  %v1186_v46 = vand.u32 2147483648, %v2898_v26  ;;  %vm1205_vm10 = vcmp.eq.f32.partialorder %v2902_v29, inf  ;;  %vm1207_vm11 = vcmp.eq.f32.partialorder %v2902_v29, 0.0 }
  0x75   : > { %2537 = vrsqrt.f32 %v2917_v35  ;;  %v1208_v49 = vand.u32 2147483648, %v2902_v29  ;;  %vm1196_vm12 = vcmp.eq.f32.partialorder %v2909_v32, inf  ;;  %vm1198_vm13 = vcmp.eq.f32.partialorder %v2909_v32, 0.0 }
  0x76   : > { %v1199_v57 = vand.u32 2147483648, %v2909_v32  ;;  %vm1214_vm14 = vcmp.eq.f32.partialorder %v2917_v35, inf  ;;  %v1217_v7 = vand.u32 2147483648, %v2917_v35  ;;  %vm1216_vm15 = vcmp.eq.f32.partialorder %v2917_v35, 0.0 }
  0x77   : > { %v391_v28 = vsub.f32 %v2905_v31, %v5088_v36 }
  0x78   : > { %v2524_v39 = vpop.eup %2523 }
  0x79   : > { %v2526_v42 = vpop.eup %2525  ;;  %v727_v43 = vmul.f32 %v2524_v39, %v725_v21 }
  0x7a   : > { %v749_v45 = vmul.f32 %v2526_v42, %v747_v23  ;;  %v2528_v47 = vpop.eup %2527 }
  0x7b   : > { %v729_v48 = vsel %vm728_vm0, %v725_v21, %v727_v43  ;;  %v2530_v50 = vpop.eup %2529  ;;  %v740_v52 = vmul.f32 %v2528_v47, %v738_v25  ;;  %v2995_v43 = vadd.s32 8, %v2913_v33  ;;  %v3002_v47 = vadd.s32 16, %v2913_v33 }
  0x7c   : > { %v732_v51 = vsel %vm730_vm1, %v731_v38, %v729_v48  ;;  %v751_v53 = vsel %vm750_vm2, %v747_v23, %v749_v45  ;;  %v2532_v54 = vpop.eup %2531  ;;  %v758_v56 = vmul.f32 %v2530_v50, %v2900_v27  ;;  %v2998_v45 = vadd.s32 120, %v2913_v33 }
  0x7d   : > { %v754_v55 = vsel %vm752_vm3, %v753_v41, %v751_v53  ;;  %v2534_v58 = vpop.eup %2533  ;;  %v733_v59 = vsub.f32 1.42, %v732_v51  ;;  %v742_v60 = vsel %vm741_vm4, %v738_v25, %v740_v52  ;;  %v1182_v61 = vmul.f32 %v2532_v54, %v2898_v26  ;;  %5116 = vst [vmem:[#allocation13_spill] sm:$0xff] %v2995_v43 }
  0x7e   : > { %v745_v62 = vsel %vm743_vm5, %v744_v40, %v742_v60  ;;  %v755_v63 = vsub.f32 1.42, %v754_v55  ;;  %v760_v0 = vsel %vm759_vm6, %v2900_v27, %v758_v56  ;;  %v1204_v1 = vmul.f32 %v2534_v58, %v2902_v29  ;;  %v2536_v2 = vpop.eup %2535 }
  0x7f   : > { %v746_v4 = vsub.f32 1.42, %v745_v62  ;;  %v763_v5 = vsel %vm761_vm7, %v762_v44, %v760_v0  ;;  %v1184_v6 = vsel %vm1183_vm8, %v2898_v26, %v1182_v61  ;;  %v2538_v8 = vpop.eup %2537  ;;  %v1195_v11 = vmul.f32 %v2536_v2, %v2909_v32 }
  0x80   : > { %v764_v9 = vsub.f32 1.42, %v763_v5  ;;  %v1187_v10 = vsel %vm1185_vm9, %v1186_v46, %v1184_v6  ;;  %v1206_v12 = vsel %vm1205_vm10, %v2902_v29, %v1204_v1  ;;  %v1213_v15 = vmul.f32 %v2538_v8, %v2917_v35 }
  0x81   : > { %v2961_v13 = vadd.f32 %v746_v4, %v733_v59  ;;  %v1209_v14 = vsel %vm1207_vm11, %v1208_v49, %v1206_v12  ;;  %v1188_v18 = vsub.f32 1.42, %v1187_v10  ;;  %v1197_v19 = vsel %vm1196_vm12, %v2909_v32, %v1195_v11 }
  0x82   : > { %v766_v16 = vadd.f32 %v764_v9, %v755_v63  ;;  %v1200_v20 = vsel %vm1198_vm13, %v1199_v57, %v1197_v19  ;;  %v1210_v21 = vsub.f32 1.42, %v1209_v14  ;;  %v1215_v22 = vsel %vm1214_vm14, %v2917_v35, %v1213_v15 }
  0x83   : > { %v1201_v24 = vsub.f32 1.42, %v1200_v20  ;;  %v1218_v25 = vsel %vm1216_vm15, %v1217_v7, %v1215_v22  ;;  %v2446_v26 = vcvt.f32.s32 %v2921_v37  ;;  %v2982_v29 = vsub.s32 2, %v2913_v33 }
  0x84   : > { %v767_v23 = vadd.f32 %v766_v16, %v2961_v13  ;;  %v1219_v27 = vsub.f32 1.42, %v1218_v25  ;;  %v392_v37 = vsub.f32 1.0, %v391_v28  ;;  %v2991_v41 = vsub.s32 0, %v2913_v33 }
  0x85   : > { %v2984_v38 = vadd.f32 %v1201_v24, %v1188_v18  ;;  %v1226_v35 = vand.u32 127, %v2446_v26  ;;  %v779_v42 = vrot.slane %v771_v34, %v2982_v29  ;;  %v3005_v48 = vadd.s32 24, %v2913_v33 }
  0x86   : > { %v768_v32 = vmax.f32 %v767_v23, 1e-12  ;;  %v2986_v39 = vadd.f32 %v1219_v27, %v1210_v21  ;;  %v3008_v49 = vadd.s32 32, %v2913_v33  ;;  %v393_v50 = vmul.f32 %v391_v28, %v391_v28 }
  0x87   : > { %v1234_v46 = vrot.slane %v1226_v35, %v2982_v29  ;;  %v3010_v51 = vmul.f32 %v392_v37, %v392_v37  ;;  %v3013_v52 = vrot.slane %v779_v42, %v2991_v41  ;;  %v775_v53 = vrot.slane %v771_v34, %v2991_v41 }
  0x88   : > { %2539 = vrcp.f32 %v768_v32  ;;  %v1222_v40 = vadd.f32 %v2986_v39, %v2984_v38  ;;  %v3017_v54 = vadd.s32 40, %v2913_v33  ;;  %v3020_v55 = vadd.s32 48, %v2913_v33 }
  0x89   : > { %v3023_v56 = vadd.s32 56, %v2913_v33  ;;  %v3026_v57 = vadd.s32 64, %v2913_v33  ;;  %v3029_v58 = vadd.s32 72, %v2913_v33  ;;  %v3032_v59 = vadd.s32 80, %v2913_v33 }
  0x8a   : > { %v1223_v44 = vmax.f32 %v1222_v40, 1e-12  ;;  %v3035_v60 = vrot.slane %v1234_v46, %v2991_v41  ;;  %v1230_v61 = vrot.slane %v1226_v35, %v2991_v41  ;;  %v3039_v62 = vadd.s32 88, %v2913_v33 }
  0x8b   : > { %v3042_v63 = vadd.s32 96, %v2913_v33  ;;  %vm630_vm0 = vcmp.lt.s32.totalorder %v2913_v33, 1  ;;  %v3046_v0 = vadd.s32 104, %v2913_v33  ;;  %v396_v1 = vrot.slane %v393_v50, 7 }
  0x8c   : > { %2541 = vrcp.f32 %v1223_v44  ;;  %v409_v2 = vrot.slane %v3010_v51, 7  ;;  %vm789_vm1 = vcmp.eq.s32.totalorder %v2913_v33, %v3013_v52  ;;  %vm791_vm2 = vcmp.eq.s32.totalorder %v2995_v43, %v3013_v52 }
  0x8d   : > { %v3054_v5 = vrot.slane %v775_v53, %v2991_v41  ;;  %v3057_v6 = vadd.s32 112, %v2913_v33  ;;  %v5089_v7 = vmov 0   ;;  %vm819_vm3 = vcmp.eq.s32.totalorder %v2998_v45, %v3013_v52 }
  0x8e   : > { %1084 = vmatprep.mubr.bf16.mxu1 %v5089_v7  ;;  %1539 = vmatprep.mubr.bf16.mxu0 %v5089_v7  ;;  %v3064_v10 = vrot.slane %v396_v1, 2  ;;  %vm1244_vm4 = vcmp.eq.s32.totalorder %v2913_v33, %v3035_v60  ;;  %vm1246_vm5 = vcmp.eq.s32.totalorder %v2995_v43, %v3035_v60  ;;  %vm1274_vm6 = vcmp.eq.s32.totalorder %v2998_v45, %v3035_v60 }
  0x8f   : > { %2511 = vset.pattern.permute.xlu0 %v5089_v7  ;;  %2512 = vset.pattern.permute.xlu1 %v5089_v7  ;;  %v3075_v11 = vrot.slane %v1230_v61, %v2991_v41  ;;  %v3077_v12 = vrot.slane %v409_v2, 2  ;;  %vm788_vm7 = vcmp.eq.s32.totalorder %v2913_v33, %v3054_v5  ;;  %vm790_vm8 = vcmp.eq.s32.totalorder %v2995_v43, %v3054_v5 }
  0x90   : > { %vm818_vm9 = vcmp.eq.s32.totalorder %v2998_v45, %v3054_v5  ;;  %v3102_v22 = vadd.f32 %v3064_v10, %v393_v50  ;;  %vm793_vm10 = vcmp.eq.s32.totalorder %v3002_v47, %v3013_v52  ;;  %vm795_vm11 = vcmp.eq.s32.totalorder %v3005_v48, %v3013_v52 }
  0x91   : > { %v3110_v25 = vadd.f32 %v3077_v12, %v393_v50  ;;  %vm1243_vm12 = vcmp.eq.s32.totalorder %v2913_v33, %v3075_v11  ;;  %vm1245_vm13 = vcmp.eq.s32.totalorder %v2995_v43, %v3075_v11  ;;  %vm1273_vm14 = vcmp.eq.s32.totalorder %v2998_v45, %v3075_v11 }
  0x92   : > { %v2540_v4 = vpop.eup %2539  ;;  %vm1248_vm15 = vcmp.eq.s32.totalorder %v3002_v47, %v3035_v60  ;;  %2543 = vrsqrt.f32 %v3102_v22 }
  0x93   : > { %v820_v8 = vmul.f32 %v2540_v4, %v2961_v13  ;;  %v872_v9 = vmul.f32 %v2540_v4, %v766_v16  ;;  %2545 = vrsqrt.f32 %v3110_v25 }
  0x95   : > { %v829_v13 = vrot.slane %v820_v8, %v2982_v29  ;;  %v881_v14 = vrot.slane %v872_v9, %v2982_v29  ;;  %v825_v15 = vrot.slane %v820_v8, %v2991_v41  ;;  %v877_v16 = vrot.slane %v872_v9, %v2991_v41 }
  0x96   : > { %v2542_v18 = vpop.eup %2541 }
  0x97   : > { %v3093_v19 = vrot.slane %v829_v13, %v2991_v41  ;;  %v3096_v20 = vrot.slane %v881_v14, %v2991_v41  ;;  %v3099_v21 = vrot.slane %v825_v15, %v2991_v41  ;;  %v1275_v23 = vmul.f32 %v2542_v18, %v2984_v38 }
  0x98   : > { %v1327_v24 = vmul.f32 %v2542_v18, %v2986_v39  ;;  %v3107_v3 = vrot.slane %v877_v16, %v2991_v41 }
  0x99   : > { %v841_v26 = vsel %vm789_vm1, %v3093_v19, 0.0  ;;  %v843_v27 = vsel %vm791_vm2, %v3093_v19, 0.0  ;;  %v893_v28 = vsel %vm789_vm1, %v3096_v20, 0.0  ;;  %v3128_v32 = vsel %vm791_vm2, %v3096_v20, 0.0 }
  0x9a   : > { %v3136_v34 = vsel %vm819_vm3, %v3096_v20, 0.0  ;;  %v925_v38 = vrot.slane %v893_v28, 7  ;;  %v927_v39 = vrot.slane %v3128_v32, 7  ;;  %v1284_v35 = vrot.slane %v1275_v23, %v2982_v29 }
  0x9b   : > { %v5091_v40 = vrot.slane %v3136_v34, 7  ;;  %v1336_v37 = vrot.slane %v1327_v24, %v2982_v29  ;;  %v840_v42 = vsel %vm788_vm7, %v3099_v21, 0.0  ;;  %v842_v44 = vsel %vm790_vm8, %v3099_v21, 0.0 }
  0x9c   : > { %v985_v46 = vsel %vm630_vm0, %v925_v38, %v927_v39  ;;  %v3163_v50 = vrot.slane %v1284_v35, %v2991_v41  ;;  %v892_v53 = vsel %vm788_vm7, %v3107_v3, 0.0  ;;  %v3173_v61 = vsel %vm790_vm8, %v3107_v3, 0.0 }
  0x9d   : > { %v987_v1 = vsel %vm630_vm0, %v5091_v40, %v925_v38  ;;  %v991_v2 = vadd.f32 %v985_v46, %v843_v27  ;;  %v3180_v4 = vrot.slane %v1336_v37, %v2991_v41  ;;  %v3186_v8 = vsel %vm818_vm9, %v3107_v3, 0.0 }
  0x9e   : > { %v989_v9 = vadd.f32 %v987_v1, %v841_v26  ;;  %v1296_v13 = vsel %vm1244_vm4, %v3163_v50, 0.0  ;;  %v1298_v14 = vsel %vm1246_vm5, %v3163_v50, 0.0  ;;  %v924_v15 = vrot.slane %v892_v53, 7 }
  0x9f   : > { %vm1250_vm1 = vcmp.eq.s32.totalorder %v3005_v48, %v3035_v60  ;;  %v1348_v16 = vsel %vm1244_vm4, %v3180_v4, 0.0  ;;  %v3208_v18 = vsel %vm1246_vm5, %v3180_v4, 0.0  ;;  %v3214_v26 = vsel %vm1274_vm6, %v3180_v4, 0.0 }
  0xa0   : > { %v5094_v27 = vrot.slane %v3173_v61, 7  ;;  %v1025_v28 = vpack.c.bf16 %v991_v2, %v989_v9  ;;  %v1380_v38 = vrot.slane %v1348_v16, 7  ;;  %v5096_v35 = vrot.slane %v3208_v18, 7 }
  0xa1   : > { %v5093_v37 = vrot.slane %v3214_v26, 7  ;;  %v5092_v46 = vrot.slane %v3186_v8, 7  ;;  %v1280_v1 = vrot.slane %v1275_v23, %v2991_v41  ;;  %v1332_v30 = vrot.slane %v1327_v24, %v2991_v41 }
  0xa2   : > { %v984_v53 = vsel %vm630_vm0, %v924_v15, %v5094_v27  ;;  %vm792_vm2 = vcmp.eq.s32.totalorder %v3002_v47, %v3054_v5  ;;  %vm794_vm4 = vcmp.eq.s32.totalorder %v3005_v48, %v3054_v5  ;;  %1052 = vmatprep.subr.bf16.mxu1 %v1025_v28  ;;  %v1440_v2 = vsel %vm630_vm0, %v1380_v38, %v5096_v35 }
  0xa3   : > { %v1442_v9 = vsel %vm630_vm0, %v5093_v37, %v1380_v38  ;;  %v990_v23 = vadd.f32 %v984_v53, %v842_v44  ;;  %v1446_v16 = vadd.f32 %v1440_v2, %v1298_v14  ;;  %v986_v28 = vsel %vm630_vm0, %v5092_v46, %v924_v15 }
  0xa4   : > { %v1444_v24 = vadd.f32 %v1442_v9, %v1296_v13  ;;  %v3244_v36 = vrot.slane %v1280_v1, %v2991_v41  ;;  %v988_v7 = vadd.f32 %v986_v28, %v840_v42  ;;  %v3247_v40 = vrot.slane %v1332_v30, %v2991_v41 }
  0xa5   : > { %v845_v44 = vsel %vm793_vm10, %v3093_v19, 0.0  ;;  %v897_v13 = vsel %vm793_vm10, %v3096_v20, 0.0  ;;  %vm1247_vm5 = vcmp.eq.s32.totalorder %v3002_v47, %v3075_v11  ;;  %vm1249_vm7 = vcmp.eq.s32.totalorder %v3005_v48, %v3075_v11 }
  0xa6   : > { %v1480_v42 = vpack.c.bf16 %v1446_v16, %v1444_v24  ;;  %v1295_v30 = vsel %vm1243_vm12, %v3244_v36, 0.0  ;;  %v1297_v14 = vsel %vm1245_vm13, %v3244_v36, 0.0  ;;  %v3273_v15 = vsel %vm795_vm11, %v3096_v20, 0.0 }
  0xa7   : > { %v1024_v38 = vpack.c.bf16 %v990_v23, %v988_v7  ;;  %v1347_v53 = vsel %vm1243_vm12, %v3247_v40, 0.0  ;;  %v1349_v1 = vsel %vm1245_vm13, %v3247_v40, 0.0  ;;  %v3287_v2 = vsel %vm1273_vm14, %v3247_v40, 0.0 }
  0xa8   : > { %1507 = vmatprep.subr.bf16.mxu0 %v1480_v42  ;;  %v1379_v9 = vrot.slane %v1347_v53, 7  ;;  %v1381_v24 = vrot.slane %v1349_v1, 7  ;;  %v5095_v7 = vrot.slane %v3287_v2, 7  ;;  %v929_v23 = vrot.slane %v897_v13, 7 }
  0xa9   : > { %vm797_vm8 = vcmp.eq.s32.totalorder %v3008_v49, %v3013_v52  ;;  %vm799_vm10 = vcmp.eq.s32.totalorder %v3017_v54, %v3013_v52  ;;  %1053 = vmatpush1.bf16.msra.mxu1 %v1024_v38  ;;  %v847_v16 = vsel %vm795_vm11, %v3093_v19, 0.0  ;;  %v931_v28 = vrot.slane %v3273_v15, 7 }
  0xaa   : > { %v1300_v42 = vsel %vm1248_vm15, %v3163_v50, 0.0  ;;  %v1352_v13 = vsel %vm1248_vm15, %v3180_v4, 0.0  ;;  %v1439_v38 = vsel %vm630_vm0, %v1379_v9, %v1381_v24  ;;  %v1441_v53 = vsel %vm630_vm0, %v5095_v7, %v1379_v9 }
  0xab   : > { %v983_v1 = vsel %vm630_vm0, %v927_v39, %v929_v23  ;;  %v3321_v46 = vsel %vm1250_vm1, %v3180_v4, 0.0  ;;  %vm1252_vm11 = vcmp.eq.s32.totalorder %v3008_v49, %v3035_v60  ;;  %v1443_v37 = vadd.f32 %v1441_v53, %v1295_v30  ;;  %v3336_v30 = vpop.eup %2543 }
  0xac   : > { %v1445_v27 = vadd.f32 %v1439_v38, %v1297_v14  ;;  %v981_v9 = vsel %vm630_vm0, %v929_v23, %v931_v28  ;;  %v993_v32 = vadd.f32 %v983_v1, %v845_v44  ;;  %vm1254_vm12 = vcmp.eq.s32.totalorder %v3017_v54, %v3035_v60 }
  0xad   : > { %v995_v39 = vadd.f32 %v981_v9, %v847_v16  ;;  %v1302_v7 = vsel %vm1250_vm1, %v3163_v50, 0.0  ;;  %v1384_v35 = vrot.slane %v1352_v13, 7  ;;  %v1386_v43 = vrot.slane %v3321_v46, 7 }
  0xae   : > { %v1479_v14 = vpack.c.bf16 %v1445_v27, %v1443_v37  ;;  %v844_v44 = vsel %vm792_vm2, %v3099_v21, 0.0  ;;  %v896_v23 = vsel %vm792_vm2, %v3107_v3, 0.0  ;;  %v3350_v16 = vsel %vm794_vm4, %v3107_v3, 0.0 }
  0xaf   : > { %vm796_vm13 = vcmp.eq.s32.totalorder %v3008_v49, %v3054_v5  ;;  %v1027_v27 = vpack.c.bf16 %v995_v39, %v993_v32  ;;  %v1436_v37 = vsel %vm630_vm0, %v1384_v35, %v1386_v43  ;;  %v5117_v46 = vrot.slane %v3208_v18, 7 }
  0xb0   : > { %v928_v38 = vrot.slane %v896_v23, 7  ;;  %vm798_vm15 = vcmp.eq.s32.totalorder %v3017_v54, %v3054_v5  ;;  %1508 = vmatpush1.bf16.msra.mxu0 %v1479_v14  ;;  %v1450_v1 = vadd.f32 %v1436_v37, %v1302_v7  ;;  %v846_v9 = vsel %vm794_vm4, %v3099_v21, 0.0 }
  0xb1   : > { %v1438_v13 = vsel %vm630_vm0, %v5117_v46, %v1384_v35  ;;  %v930_v32 = vrot.slane %v3350_v16, 7  ;;  %1054 = vmatprep.subr.bf16.mxu1 %v1027_v27  ;;  %v5118_v18 = vrot.slane %v3173_v61, 7  ;;  %v1299_v39 = vsel %vm1247_vm5, %v3244_v36, 0.0 }
  0xb2   : > { %v1448_v53 = vadd.f32 %v1438_v13, %v1300_v42  ;;  %v1351_v7 = vsel %vm1247_vm5, %v3247_v40, 0.0  ;;  %v3383_v42 = vsel %vm1249_vm7, %v3247_v40, 0.0  ;;  %vm1251_vm1 = vcmp.eq.s32.totalorder %v3008_v49, %v3075_v11 }
  0xb3   : > { %v982_v35 = vsel %vm630_vm0, %v5118_v18, %v928_v38  ;;  %vm1253_vm2 = vcmp.eq.s32.totalorder %v3017_v54, %v3075_v11  ;;  %v980_v14 = vsel %vm630_vm0, %v928_v38, %v930_v32  ;;  %v1383_v16 = vrot.slane %v1351_v7, 7 }
  0xb4   : > { %v1482_v61 = vpack.c.bf16 %v1450_v1, %v1448_v53  ;;  %v992_v23 = vadd.f32 %v982_v35, %v844_v44  ;;  %v994_v27 = vadd.f32 %v980_v14, %v846_v9  ;;  %v1301_v37 = vsel %vm1249_vm7, %v3244_v36, 0.0 }
  0xb5   : > { %v1385_v46 = vrot.slane %v3383_v42, 7  ;;  %v849_v13 = vsel %vm797_vm8, %v3093_v19, 0.0  ;;  %v1437_v53 = vsel %vm630_vm0, %v1381_v24, %v1383_v16  ;;  %v851_v44 = vsel %vm799_vm10, %v3093_v19, 0.0 }
  0xb6   : > { %1509 = vmatprep.subr.bf16.mxu0 %v1482_v61  ;;  %v901_v38 = vsel %vm797_vm8, %v3096_v20, 0.0  ;;  %v3414_v1 = vsel %vm799_vm10, %v3096_v20, 0.0  ;;  %vm801_vm4 = vcmp.eq.s32.totalorder %v3020_v55, %v3013_v52  ;;  %vm803_vm5 = vcmp.eq.s32.totalorder %v3023_v56, %v3013_v52 }
  0xb7   : > { %v1026_v24 = vpack.c.bf16 %v994_v27, %v992_v23  ;;  %v1435_v9 = vsel %vm630_vm0, %v1383_v16, %v1385_v46  ;;  %v1447_v18 = vadd.f32 %v1437_v53, %v1299_v39  ;;  %v933_v35 = vrot.slane %v901_v38, 7 }
  0xb8   : > { %v1449_v7 = vadd.f32 %v1435_v9, %v1301_v37  ;;  %v935_v42 = vrot.slane %v3414_v1, 7  ;;  %v1304_v61 = vsel %vm1252_vm11, %v3163_v50, 0.0  ;;  %v1356_v14 = vsel %vm1252_vm11, %v3180_v4, 0.0 }
  0xb9   : > { %vm1256_vm7 = vcmp.eq.s32.totalorder %v3020_v55, %v3035_v60  ;;  %1055 = vmatpush1.bf16.msra.mxu1 %v1026_v24  ;;  %v979_v39 = vsel %vm630_vm0, %v931_v28, %v933_v35  ;;  %v1306_v23 = vsel %vm1254_vm12, %v3163_v50, 0.0  ;;  %v3445_v16 = vsel %vm1254_vm12, %v3180_v4, 0.0 }
  0xba   : > { %v1388_v27 = vrot.slane %v1356_v14, 7  ;;  %vm1258_vm8 = vcmp.eq.s32.totalorder %v3023_v56, %v3035_v60  ;;  %v1481_v37 = vpack.c.bf16 %v1449_v7, %v1447_v18  ;;  %v977_v15 = vsel %vm630_vm0, %v933_v35, %v935_v42 }
  0xbb   : > { %v997_v28 = vadd.f32 %v979_v39, %v849_v13  ;;  %v1390_v53 = vrot.slane %v3445_v16, 7  ;;  %v999_v38 = vadd.f32 %v977_v15, %v851_v44  ;;  %v848_v24 = vsel %vm796_vm13, %v3099_v21, 0.0 }
  0xbc   : > { %v1434_v1 = vsel %vm630_vm0, %v1386_v43, %v1388_v27  ;;  %v900_v9 = vsel %vm796_vm13, %v3107_v3, 0.0  ;;  %vm800_vm10 = vcmp.eq.s32.totalorder %v3020_v55, %v3054_v5  ;;  %1510 = vmatpush1.bf16.msra.mxu0 %v1481_v37  ;;  %v3470_v43 = vsel %vm798_vm15, %v3107_v3, 0.0 }
  0xbd   : > { %v1432_v13 = vsel %vm630_vm0, %v1388_v27, %v1390_v53  ;;  %v1452_v44 = vadd.f32 %v1434_v1, %v1304_v61  ;;  %v932_v18 = vrot.slane %v900_v9, 7  ;;  %vm802_vm11 = vcmp.eq.s32.totalorder %v3023_v56, %v3054_v5 }
  0xbe   : > { %v1029_v35 = vpack.c.bf16 %v999_v38, %v997_v28  ;;  %v1454_v7 = vadd.f32 %v1432_v13, %v1306_v23  ;;  %v850_v14 = vsel %vm798_vm15, %v3099_v21, 0.0  ;;  %v934_v39 = vrot.slane %v3470_v43, 7 }
  0xbf   : > { %v978_v61 = vsel %vm630_vm0, %v930_v32, %v932_v18  ;;  %v1303_v16 = vsel %vm1251_vm1, %v3244_v36, 0.0  ;;  %v1355_v23 = vsel %vm1251_vm1, %v3247_v40, 0.0  ;;  %v3493_v27 = vsel %vm1253_vm2, %v3247_v40, 0.0 }
  0xc0   : > { %vm1255_vm12 = vcmp.eq.s32.totalorder %v3020_v55, %v3075_v11  ;;  %vm1257_vm13 = vcmp.eq.s32.totalorder %v3023_v56, %v3075_v11  ;;  %1056 = vmatprep.subr.bf16.mxu1 %v1029_v35  ;;  %v1484_v32 = vpack.c.bf16 %v1454_v7, %v1452_v44  ;;  %v976_v37 = vsel %vm630_vm0, %v932_v18, %v934_v39 }
  0xc1   : > { %v996_v15 = vadd.f32 %v978_v61, %v848_v24  ;;  %v1387_v28 = vrot.slane %v1355_v23, 7  ;;  %v998_v38 = vadd.f32 %v976_v37, %v850_v14  ;;  %v1305_v1 = vsel %vm1253_vm2, %v3244_v36, 0.0 }
  0xc2   : > { %v1389_v9 = vrot.slane %v3493_v27, 7  ;;  %v853_v13 = vsel %vm801_vm4, %v3093_v19, 0.0  ;;  %1511 = vmatprep.subr.bf16.mxu0 %v1484_v32  ;;  %v855_v24 = vsel %vm803_vm5, %v3093_v19, 0.0  ;;  %v905_v43 = vsel %vm801_vm4, %v3096_v20, 0.0 }
  0xc3   : > { %v1433_v44 = vsel %vm630_vm0, %v1385_v46, %v1387_v28  ;;  %v3524_v18 = vsel %vm803_vm5, %v3096_v20, 0.0  ;;  %vm805_vm15 = vcmp.eq.s32.totalorder %v3026_v57, %v3013_v52  ;;  %vm807_vm1 = vcmp.eq.s32.totalorder %v3029_v58, %v3013_v52 }
  0xc4   : > { %v1028_v46 = vpack.c.bf16 %v998_v38, %v996_v15  ;;  %v1431_v35 = vsel %vm630_vm0, %v1387_v28, %v1389_v9  ;;  %v1451_v7 = vadd.f32 %v1433_v44, %v1303_v16  ;;  %v937_v14 = vrot.slane %v905_v43, 7 }
  0xc5   : > { %v1453_v61 = vadd.f32 %v1431_v35, %v1305_v1  ;;  %v939_v23 = vrot.slane %v3524_v18, 7  ;;  %v1308_v27 = vsel %vm1256_vm7, %v3163_v50, 0.0  ;;  %v1360_v32 = vsel %vm1256_vm7, %v3180_v4, 0.0 }
  0xc6   : > { %vm1260_vm2 = vcmp.eq.s32.totalorder %v3026_v57, %v3035_v60  ;;  %1057 = vmatpush1.bf16.msra.mxu1 %v1028_v46  ;;  %v975_v16 = vsel %vm630_vm0, %v935_v42, %v937_v14  ;;  %v1310_v37 = vsel %vm1258_vm8, %v3163_v50, 0.0  ;;  %v3553_v15 = vsel %vm1258_vm8, %v3180_v4, 0.0 }
  0xc7   : > { %v1392_v28 = vrot.slane %v1360_v32, 7  ;;  %vm1262_vm4 = vcmp.eq.s32.totalorder %v3029_v58, %v3035_v60  ;;  %v1483_v38 = vpack.c.bf16 %v1453_v61, %v1451_v7  ;;  %v973_v1 = vsel %vm630_vm0, %v937_v14, %v939_v23 }
  0xc8   : > { %v1001_v42 = vadd.f32 %v975_v16, %v853_v13  ;;  %v1394_v44 = vrot.slane %v3553_v15, 7  ;;  %v1003_v43 = vadd.f32 %v973_v1, %v855_v24  ;;  %v852_v46 = vsel %vm800_vm10, %v3099_v21, 0.0 }
  0xc9   : > { %v1430_v18 = vsel %vm630_vm0, %v1390_v53, %v1392_v28  ;;  %v904_v35 = vsel %vm800_vm10, %v3107_v3, 0.0  ;;  %vm804_vm5 = vcmp.eq.s32.totalorder %v3026_v57, %v3054_v5  ;;  %1512 = vmatpush1.bf16.msra.mxu0 %v1483_v38  ;;  %v3578_v53 = vsel %vm802_vm11, %v3107_v3, 0.0 }
  0xca   : > { %v1428_v13 = vsel %vm630_vm0, %v1392_v28, %v1394_v44  ;;  %v1456_v24 = vadd.f32 %v1430_v18, %v1308_v27  ;;  %v936_v7 = vrot.slane %v904_v35, 7  ;;  %vm806_vm7 = vcmp.eq.s32.totalorder %v3029_v58, %v3054_v5 }
  0xcb   : > { %v1031_v14 = vpack.c.bf16 %v1003_v43, %v1001_v42  ;;  %v1458_v61 = vadd.f32 %v1428_v13, %v1310_v37  ;;  %v854_v32 = vsel %vm802_vm11, %v3099_v21, 0.0  ;;  %v938_v16 = vrot.slane %v3578_v53, 7 }
  0xcc   : > { %v974_v27 = vsel %vm630_vm0, %v934_v39, %v936_v7  ;;  %v1307_v15 = vsel %vm1255_vm12, %v3244_v36, 0.0  ;;  %v1359_v37 = vsel %vm1255_vm12, %v3247_v40, 0.0  ;;  %v3601_v28 = vsel %vm1257_vm13, %v3247_v40, 0.0 }
  0xcd   : > { %vm1259_vm8 = vcmp.eq.s32.totalorder %v3026_v57, %v3075_v11  ;;  %vm1261_vm10 = vcmp.eq.s32.totalorder %v3029_v58, %v3075_v11  ;;  %1058 = vmatprep.subr.bf16.mxu1 %v1031_v14  ;;  %v1486_v39 = vpack.c.bf16 %v1458_v61, %v1456_v24  ;;  %v972_v38 = vsel %vm630_vm0, %v936_v7, %v938_v16 }
  0xce   : > { %v1000_v1 = vadd.f32 %v974_v27, %v852_v46  ;;  %v1391_v42 = vrot.slane %v1359_v37, 7  ;;  %v1002_v43 = vadd.f32 %v972_v38, %v854_v32  ;;  %v1309_v18 = vsel %vm1257_vm13, %v3244_v36, 0.0 }
  0xcf   : > { %v1393_v35 = vrot.slane %v3601_v28, 7  ;;  %v857_v13 = vsel %vm805_vm15, %v3093_v19, 0.0  ;;  %1513 = vmatprep.subr.bf16.mxu0 %v1486_v39  ;;  %v859_v46 = vsel %vm807_vm1, %v3093_v19, 0.0  ;;  %v909_v53 = vsel %vm805_vm15, %v3096_v20, 0.0 }
  0xd0   : > { %v1429_v24 = vsel %vm630_vm0, %v1389_v9, %v1391_v42  ;;  %v3632_v7 = vsel %vm807_vm1, %v3096_v20, 0.0  ;;  %vm809_vm11 = vcmp.eq.s32.totalorder %v3032_v59, %v3013_v52  ;;  %vm811_vm12 = vcmp.eq.s32.totalorder %v3039_v62, %v3013_v52 }
  0xd1   : > { %v1030_v9 = vpack.c.bf16 %v1002_v43, %v1000_v1  ;;  %v1427_v14 = vsel %vm630_vm0, %v1391_v42, %v1393_v35  ;;  %v1455_v61 = vadd.f32 %v1429_v24, %v1307_v15  ;;  %v941_v32 = vrot.slane %v909_v53, 7 }
  0xd2   : > { %v1457_v27 = vadd.f32 %v1427_v14, %v1309_v18  ;;  %v943_v37 = vrot.slane %v3632_v7, 7  ;;  %v1312_v28 = vsel %vm1260_vm2, %v3163_v50, 0.0  ;;  %v1364_v39 = vsel %vm1260_vm2, %v3180_v4, 0.0 }
  0xd3   : > { %vm1264_vm13 = vcmp.eq.s32.totalorder %v3032_v59, %v3035_v60  ;;  %1059 = vmatpush1.bf16.msra.mxu1 %v1030_v9  ;;  %v971_v15 = vsel %vm630_vm0, %v939_v23, %v941_v32  ;;  %v1314_v38 = vsel %vm1262_vm4, %v3163_v50, 0.0  ;;  %v3661_v1 = vsel %vm1262_vm4, %v3180_v4, 0.0 }
  0xd4   : > { %v1396_v42 = vrot.slane %v1364_v39, 7  ;;  %vm1266_vm15 = vcmp.eq.s32.totalorder %v3039_v62, %v3035_v60  ;;  %v1485_v43 = vpack.c.bf16 %v1457_v27, %v1455_v61  ;;  %v969_v18 = vsel %vm630_vm0, %v941_v32, %v943_v37 }
  0xd5   : > { %v1005_v23 = vadd.f32 %v971_v15, %v857_v13  ;;  %v1398_v24 = vrot.slane %v3661_v1, 7  ;;  %v1007_v53 = vadd.f32 %v969_v18, %v859_v46  ;;  %v856_v9 = vsel %vm804_vm5, %v3099_v21, 0.0 }
  0xd6   : > { %v1426_v7 = vsel %vm630_vm0, %v1394_v44, %v1396_v42  ;;  %v908_v14 = vsel %vm804_vm5, %v3107_v3, 0.0  ;;  %vm808_vm1 = vcmp.eq.s32.totalorder %v3032_v59, %v3054_v5  ;;  %1514 = vmatpush1.bf16.msra.mxu0 %v1485_v43  ;;  %v3686_v44 = vsel %vm806_vm7, %v3107_v3, 0.0 }
  0xd7   : > { %v1424_v13 = vsel %vm630_vm0, %v1396_v42, %v1398_v24  ;;  %v1460_v46 = vadd.f32 %v1426_v7, %v1312_v28  ;;  %v940_v61 = vrot.slane %v908_v14, 7  ;;  %vm810_vm2 = vcmp.eq.s32.totalorder %v3039_v62, %v3054_v5 }
  0xd8   : > { %v1033_v32 = vpack.c.bf16 %v1007_v53, %v1005_v23  ;;  %v1462_v27 = vadd.f32 %v1424_v13, %v1314_v38  ;;  %v858_v39 = vsel %vm806_vm7, %v3099_v21, 0.0  ;;  %v942_v15 = vrot.slane %v3686_v44, 7 }
  0xd9   : > { %v970_v28 = vsel %vm630_vm0, %v938_v16, %v940_v61  ;;  %v1311_v1 = vsel %vm1259_vm8, %v3244_v36, 0.0  ;;  %v1363_v38 = vsel %vm1259_vm8, %v3247_v40, 0.0  ;;  %v3709_v42 = vsel %vm1261_vm10, %v3247_v40, 0.0 }
  0xda   : > { %vm1263_vm4 = vcmp.eq.s32.totalorder %v3032_v59, %v3075_v11  ;;  %vm1265_vm5 = vcmp.eq.s32.totalorder %v3039_v62, %v3075_v11  ;;  %1060 = vmatprep.subr.bf16.mxu1 %v1033_v32  ;;  %v1488_v16 = vpack.c.bf16 %v1462_v27, %v1460_v46  ;;  %v968_v43 = vsel %vm630_vm0, %v940_v61, %v942_v15 }
  0xdb   : > { %v1004_v18 = vadd.f32 %v970_v28, %v856_v9  ;;  %v1395_v23 = vrot.slane %v1363_v38, 7  ;;  %v1006_v53 = vadd.f32 %v968_v43, %v858_v39  ;;  %v1313_v7 = vsel %vm1261_vm10, %v3244_v36, 0.0 }
  0xdc   : > { %v1397_v14 = vrot.slane %v3709_v42, 7  ;;  %v861_v13 = vsel %vm809_vm11, %v3093_v19, 0.0  ;;  %1515 = vmatprep.subr.bf16.mxu0 %v1488_v16  ;;  %v863_v9 = vsel %vm811_vm12, %v3093_v19, 0.0  ;;  %v913_v44 = vsel %vm809_vm11, %v3096_v20, 0.0 }
  0xdd   : > { %v1425_v46 = vsel %vm630_vm0, %v1393_v35, %v1395_v23  ;;  %v3740_v61 = vsel %vm811_vm12, %v3096_v20, 0.0  ;;  %vm813_vm7 = vcmp.eq.s32.totalorder %v3042_v63, %v3013_v52  ;;  %vm815_vm8 = vcmp.eq.s32.totalorder %v3046_v0, %v3013_v52 }
  0xde   : > { %v1032_v35 = vpack.c.bf16 %v1006_v53, %v1004_v18  ;;  %v1423_v32 = vsel %vm630_vm0, %v1395_v23, %v1397_v14  ;;  %v1459_v27 = vadd.f32 %v1425_v46, %v1311_v1  ;;  %v945_v39 = vrot.slane %v913_v44, 7 }
  0xdf   : > { %v1461_v28 = vadd.f32 %v1423_v32, %v1313_v7  ;;  %v947_v38 = vrot.slane %v3740_v61, 7  ;;  %v1316_v42 = vsel %vm1264_vm13, %v3163_v50, 0.0  ;;  %v1368_v16 = vsel %vm1264_vm13, %v3180_v4, 0.0 }
  0xe0   : > { %vm1268_vm10 = vcmp.eq.s32.totalorder %v3042_v63, %v3035_v60  ;;  %1061 = vmatpush1.bf16.msra.mxu1 %v1032_v35  ;;  %v967_v1 = vsel %vm630_vm0, %v943_v37, %v945_v39  ;;  %v1318_v43 = vsel %vm1266_vm15, %v3163_v50, 0.0  ;;  %v3769_v18 = vsel %vm1266_vm15, %v3180_v4, 0.0 }
  0xe1   : > { %v1400_v23 = vrot.slane %v1368_v16, 7  ;;  %vm1270_vm11 = vcmp.eq.s32.totalorder %v3046_v0, %v3035_v60  ;;  %v1487_v53 = vpack.c.bf16 %v1461_v28, %v1459_v27  ;;  %v965_v7 = vsel %vm630_vm0, %v945_v39, %v947_v38 }
  0xe2   : > { %v1009_v37 = vadd.f32 %v967_v1, %v861_v13  ;;  %v1402_v46 = vrot.slane %v3769_v18, 7  ;;  %v1011_v44 = vadd.f32 %v965_v7, %v863_v9  ;;  %v860_v35 = vsel %vm808_vm1, %v3099_v21, 0.0 }
  0xe3   : > { %v1422_v61 = vsel %vm630_vm0, %v1398_v24, %v1400_v23  ;;  %v912_v32 = vsel %vm808_vm1, %v3107_v3, 0.0  ;;  %vm812_vm12 = vcmp.eq.s32.totalorder %v3042_v63, %v3054_v5  ;;  %1516 = vmatpush1.bf16.msra.mxu0 %v1487_v53  ;;  %v3794_v24 = vsel %vm810_vm2, %v3107_v3, 0.0 }
  0xe4   : > { %v1420_v13 = vsel %vm630_vm0, %v1400_v23, %v1402_v46  ;;  %v1464_v9 = vadd.f32 %v1422_v61, %v1316_v42  ;;  %v944_v27 = vrot.slane %v912_v32, 7  ;;  %vm814_vm13 = vcmp.eq.s32.totalorder %v3046_v0, %v3054_v5 }
  0xe5   : > { %v1035_v39 = vpack.c.bf16 %v1011_v44, %v1009_v37  ;;  %v1466_v28 = vadd.f32 %v1420_v13, %v1318_v43  ;;  %v862_v16 = vsel %vm810_vm2, %v3099_v21, 0.0  ;;  %v946_v1 = vrot.slane %v3794_v24, 7 }
  0xe6   : > { %v966_v42 = vsel %vm630_vm0, %v942_v15, %v944_v27  ;;  %v1315_v18 = vsel %vm1263_vm4, %v3244_v36, 0.0  ;;  %v1367_v43 = vsel %vm1263_vm4, %v3247_v40, 0.0  ;;  %v3817_v23 = vsel %vm1265_vm5, %v3247_v40, 0.0 }
  0xe7   : > { %vm1267_vm15 = vcmp.eq.s32.totalorder %v3042_v63, %v3075_v11  ;;  %vm1269_vm1 = vcmp.eq.s32.totalorder %v3046_v0, %v3075_v11  ;;  %1062 = vmatprep.subr.bf16.mxu1 %v1035_v39  ;;  %v1490_v15 = vpack.c.bf16 %v1466_v28, %v1464_v9  ;;  %v964_v53 = vsel %vm630_vm0, %v944_v27, %v946_v1 }
  0xe8   : > { %v1008_v7 = vadd.f32 %v966_v42, %v860_v35  ;;  %v1399_v37 = vrot.slane %v1367_v43, 7  ;;  %v1010_v44 = vadd.f32 %v964_v53, %v862_v16  ;;  %v1317_v61 = vsel %vm1265_vm5, %v3244_v36, 0.0 }
  0xe9   : > { %v1401_v32 = vrot.slane %v3817_v23, 7  ;;  %v865_v13 = vsel %vm813_vm7, %v3093_v19, 0.0  ;;  %1517 = vmatprep.subr.bf16.mxu0 %v1490_v15  ;;  %v867_v35 = vsel %vm815_vm8, %v3093_v19, 0.0  ;;  %v917_v24 = vsel %vm813_vm7, %v3096_v20, 0.0 }
  0xea   : > { %v1421_v9 = vsel %vm630_vm0, %v1397_v14, %v1399_v37  ;;  %v3848_v27 = vsel %vm815_vm8, %v3096_v20, 0.0  ;;  %vm817_vm2 = vcmp.eq.s32.totalorder %v3057_v6, %v3013_v52  ;;  %v1034_v14 = vpack.c.bf16 %v1010_v44, %v1008_v7 }
  0xeb   : > { %v1419_v39 = vsel %vm630_vm0, %v1399_v37, %v1401_v32  ;;  %v1463_v28 = vadd.f32 %v1421_v9, %v1315_v18  ;;  %v949_v16 = vrot.slane %v917_v24, 7  ;;  %v951_v43 = vrot.slane %v3848_v27, 7 }
  0xec   : > { %v1465_v42 = vadd.f32 %v1419_v39, %v1317_v61  ;;  %v1320_v23 = vsel %vm1268_vm10, %v3163_v50, 0.0  ;;  %v1372_v15 = vsel %vm1268_vm10, %v3180_v4, 0.0  ;;  %vm1272_vm4 = vcmp.eq.s32.totalorder %v3057_v6, %v3035_v60  ;;  %1063 = vmatpush1.bf16.msra.mxu1 %v1034_v14 }
  0xed   : > { %v963_v18 = vsel %vm630_vm0, %v947_v38, %v949_v16  ;;  %v1322_v53 = vsel %vm1270_vm11, %v3163_v50, 0.0  ;;  %v1374_v7 = vsel %vm1270_vm11, %v3180_v4, 0.0  ;;  %v1404_v37 = vrot.slane %v1372_v15, 7 }
  0xee   : > { %vm816_vm5 = vcmp.eq.s32.totalorder %v3057_v6, %v3054_v5  ;;  %v1489_v44 = vpack.c.bf16 %v1465_v42, %v1463_v28  ;;  %v961_v61 = vsel %vm630_vm0, %v949_v16, %v951_v43  ;;  %v1013_v9 = vadd.f32 %v963_v18, %v865_v13 }
  0xef   : > { %v1406_v38 = vrot.slane %v1374_v7, 7  ;;  %v1015_v24 = vadd.f32 %v961_v61, %v867_v35  ;;  %v1418_v27 = vsel %vm630_vm0, %v1402_v46, %v1404_v37  ;;  %v864_v14 = vsel %vm812_vm12, %v3099_v21, 0.0 }
  0xf0   : > { %v916_v39 = vsel %vm812_vm12, %v3107_v3, 0.0  ;;  %1518 = vmatpush1.bf16.msra.mxu0 %v1489_v44  ;;  %v1468_v13 = vadd.f32 %v1418_v27, %v1320_v23  ;;  %v918_v46 = vsel %vm814_vm13, %v3107_v3, 0.0  ;;  %v866_v15 = vsel %vm814_vm13, %v3099_v21, 0.0 }
  0xf1   : > { %v1416_v28 = vsel %vm630_vm0, %v1404_v37, %v1406_v38  ;;  %v948_v35 = vrot.slane %v916_v39, 7  ;;  %v1037_v16 = vpack.c.bf16 %v1015_v24, %v1013_v9  ;;  %v950_v18 = vrot.slane %v918_v46, 7 }
  0xf2   : > { %v1470_v42 = vadd.f32 %v1416_v28, %v1322_v53  ;;  %vm1271_vm7 = vcmp.eq.s32.totalorder %v3057_v6, %v3075_v11  ;;  %v1319_v7 = vsel %vm1267_vm15, %v3244_v36, 0.0  ;;  %v1371_v53 = vsel %vm1267_vm15, %v3247_v40, 0.0 }
  0xf3   : > { %v962_v23 = vsel %vm630_vm0, %v946_v1, %v948_v35  ;;  %v1373_v37 = vsel %vm1269_vm1, %v3247_v40, 0.0  ;;  %1064 = vmatprep.subr.bf16.mxu1 %v1037_v16  ;;  %v960_v1 = vsel %vm630_vm0, %v948_v35, %v950_v18  ;;  %v1403_v9 = vrot.slane %v1371_v53, 7 }
  0xf4   : > { %v1492_v44 = vpack.c.bf16 %v1470_v42, %v1468_v13  ;;  %v1012_v61 = vadd.f32 %v962_v23, %v864_v14  ;;  %v1014_v24 = vadd.f32 %v960_v1, %v866_v15  ;;  %v1321_v27 = vsel %vm1269_vm1, %v3244_v36, 0.0 }
  0xf5   : > { %v1405_v39 = vrot.slane %v1373_v37, 7  ;;  %v869_v28 = vsel %vm817_vm2, %v3093_v19, 0.0  ;;  %v1417_v13 = vsel %vm630_vm0, %v1401_v32, %v1403_v9  ;;  %v871_v14 = vsel %vm819_vm3, %v3093_v19, 0.0 }
  0xf6   : > { %1519 = vmatprep.subr.bf16.mxu0 %v1492_v44  ;;  %v921_v46 = vsel %vm817_vm2, %v3096_v20, 0.0  ;;  %v1324_v35 = vsel %vm1272_vm4, %v3163_v50, 0.0  ;;  %v1036_v16 = vpack.c.bf16 %v1014_v24, %v1012_v61  ;;  %v1467_v32 = vadd.f32 %v1417_v13, %v1319_v7 }
  0xf7   : > { %v1415_v42 = vsel %vm630_vm0, %v1403_v9, %v1405_v39  ;;  %v953_v15 = vrot.slane %v921_v46, 7  ;;  %v1326_v19 = vsel %vm1274_vm6, %v3163_v50, 0.0  ;;  %v1376_v52 = vsel %vm1272_vm4, %v3180_v4, 0.0 }
  0xf8   : > { %v1469_v23 = vadd.f32 %v1415_v42, %v1321_v27  ;;  %v870_v20 = vsel %vm818_vm9, %v3099_v21, 0.0  ;;  %1065 = vmatpush1.bf16.msra.mxu1 %v1036_v16  ;;  %v5119_v7 = vrot.slane %v3136_v34, 7  ;;  %v1408_v50 = vrot.slane %v1376_v52, 7  ;;  %v2514_v52 = vld [vmem:[%s5073_s1 + $0x8] ss:$16 sps:$4 sm:$0xff]  }
  0xf9   : > { %v959_v37 = vsel %vm630_vm0, %v951_v43, %v953_v15  ;;  %v920_v60 = vsel %vm816_vm5, %v3107_v3, 0.0  ;;  %v5120_v9 = vrot.slane %v3214_v26, 7  ;;  %v868_v43 = vsel %vm816_vm5, %v3099_v21, 0.0 }
  0xfa   : > { %v957_v53 = vsel %vm630_vm0, %v953_v15, %v5119_v7  ;;  %v1491_v4 = vpack.c.bf16 %v1469_v23, %v1467_v32  ;;  %v1017_v44 = vadd.f32 %v959_v37, %v869_v28  ;;  %v952_v61 = vrot.slane %v920_v60, 7 }
  0xfb   : > { %v1019_v1 = vadd.f32 %v957_v53, %v871_v14  ;;  %v1412_v34 = vsel %vm630_vm0, %v1408_v50, %v5120_v9  ;;  %v1414_v24 = vsel %vm630_vm0, %v1406_v38, %v1408_v50  ;;  %v3975_v3 = vadd.f32 %v3064_v10, %v3010_v51 }
  0xfc   : > { %1520 = vmatpush1.bf16.msra.mxu0 %v1491_v4  ;;  %v1472_v28 = vadd.f32 %v1414_v24, %v1324_v35  ;;  %v1474_v13 = vadd.f32 %v1412_v34, %v1326_v19  ;;  %v5121_v26 = vrot.slane %v3186_v8, 7  ;;  %v958_v38 = vsel %vm630_vm0, %v950_v18, %v952_v61  ;;  %v2546_v4 = vpop.eup %2545 }
  0xfd   : > { %v1039_v27 = vpack.c.bf16 %v1019_v1, %v1017_v44  ;;  %v1323_v5 = vsel %vm1271_vm7, %v3244_v36, 0.0  ;;  %v1375_v10 = vsel %vm1271_vm7, %v3247_v40, 0.0  ;;  %v1016_v8 = vadd.f32 %v958_v38, %v868_v43  ;;  %v2515_v44 = vld [vmem:[%s5073_s1 + $0x24] ss:$16 sps:$4 sm:$0xff]  }
  0xfe   : > { %v956_v14 = vsel %vm630_vm0, %v952_v61, %v5121_v26  ;;  %v1494_v21 = vpack.c.bf16 %v1474_v13, %v1472_v28  ;;  %v1325_v35 = vsel %vm1273_vm14, %v3244_v36, 0.0  ;;  %v1407_v18 = vrot.slane %v1375_v10, 7  ;;  %v2516_v13 = vld [vmem:[%s5073_s1 + $0x28] ss:$16 sps:$4 sm:$0xff]  }
  0xff   : > { %v1018_v46 = vadd.f32 %v956_v14, %v870_v20  ;;  %1066 = vmatprep.subr.bf16.mxu1 %v1039_v27  ;;  %v3998_v16 = vadd.f32 %v3077_v12, %v3010_v51  ;;  %v1569_v42 = vfloor.f32 %v3090_v17  ;;  %v5122_v40 = vrot.slane %v3287_v2, 7  ;;  %v2513_v51 = vld [vmem:[%s5073_s1 + $0x4] ss:$16 sps:$4 sm:$0xff]  }
 0x100   : > { %1521 = vmatprep.subr.bf16.mxu0 %v1494_v21  ;;  %v1413_v11 = vsel %vm630_vm0, %v1405_v39, %v1407_v18  ;;  %v401_v36 = vmul.f32 %v3336_v30, %v3102_v22  ;;  %vm402_vm3 = vcmp.eq.f32.partialorder %v3102_v22, inf  ;;  %2547 = vrsqrt.f32 %v3975_v3 }
 0x101   : > { %v1038_v32 = vpack.c.bf16 %v1018_v46, %v1016_v8  ;;  %v1411_v15 = vsel %vm630_vm0, %v1407_v18, %v5122_v40  ;;  %v1471_v23 = vadd.f32 %v1413_v11, %v1323_v5  ;;  %v405_v2 = vand.u32 2147483648, %v3102_v22 }
 0x102   : > { %v1473_v19 = vadd.f32 %v1411_v15, %v1325_v35  ;;  %2549 = vrsqrt.f32 %v3998_v16  ;;  %v403_v39 = vsel %vm402_vm3, %v3102_v22, %v401_v36  ;;  %vm404_vm6 = vcmp.eq.f32.partialorder %v3102_v22, 0.0 }
 0x103   : > { %1067 = vmatpush1.bf16.msra.mxu1 %v1038_v32  ;;  %v1570_v30 = vsub.f32 %v3090_v17, %v1569_v42  ;;  %v5123_v53 = vmov 0   ;;  %v406_v37 = vsel %vm404_vm6, %v405_v2, %v403_v39  ;;  %vm415_vm9 = vcmp.eq.f32.partialorder %v3110_v25, inf  ;;  %v1966_v39 = vld [vmem:[%s5074_s2] sm:$0xff] }
 0x104   : > { %v1493_v12 = vpack.c.bf16 %v1473_v19, %v1471_v23  ;;  %v418_v22 = vand.u32 2147483648, %v3110_v25  ;;  %v407_v1 = vsub.f32 1.42, %v406_v37  ;;  %v414_v61 = vmul.f32 %v2546_v4, %v3110_v25  ;;  %1972 = vperm.xlu0 %2511, %v1966_v39   ;;  %v1969_v37 = vld [vmem:[%s5074_s2 + $0x18] sm:$0xff] }
 0x105   : > { %v1571_v20 = vsub.f32 1.0, %v1570_v30  ;;  %v1572_v7 = vmul.f32 %v1570_v30, %v1570_v30  ;;  %vm417_vm14 = vcmp.eq.f32.partialorder %v3110_v25, 0.0  ;;  %vm424_vm8 = vcmp.eq.f32.partialorder %v3975_v3, inf }
 0x106   : > { %1522 = vmatpush1.bf16.msra.mxu0 %v1493_v12  ;;  %1085 = vmatmul.mubr.bf16.vlgmr.msra.gmra.mrb[0].mxu1 %v2513_v51  ;;  %vm426_vm10 = vcmp.eq.f32.partialorder %v3975_v3, 0.0  ;;  %v416_v43 = vsel %vm415_vm9, %v3110_v25, %v414_v61  ;;  %v427_v27 = vand.u32 2147483648, %v3975_v3  ;;  %vm433_vm11 = vcmp.eq.f32.partialorder %v3998_v16, inf }
 0x107   : > { %1094 = vmatprep.mubr.bf16.mxu1 %v5123_v53  ;;  %v1573_v50 = vmul.f32 %v1571_v20, %v1571_v20  ;;  %v1575_v60 = vrot.slane %v1572_v7, 7  ;;  %v436_v28 = vand.u32 2147483648, %v3998_v16  ;;  %v419_v14 = vsel %vm417_vm14, %v418_v22, %v416_v43 }
 0x108   : > { %v420_v10 = vsub.f32 1.42, %v419_v14  ;;  %vm435_vm12 = vcmp.eq.f32.partialorder %v3998_v16, 0.0  ;;  %v5124_v35 = vfloor.f32 %v2905_v31  ;;  %v2447_v2 = vtrunc.f32 %v1569_v42 }
 0x109   : > { %1540 = vmatmul.mubr.bf16.vlgmr.msra.gmra.mrb[0].mxu0 %v2514_v52  ;;  %v1576_v9 = vrot.slane %v1575_v60, 2  ;;  %v1588_v34 = vrot.slane %v1573_v50, 7  ;;  %v1968_v52 = vld [vmem:[%s5074_s2 + $0x10] sm:$0xff] }
 0x10a   : > { %1549 = vmatprep.mubr.bf16.mxu0 %v5123_v53  ;;  %v2548_v24 = vpop.eup %2547  ;;  %v2441_v18 = vtrunc.f32 %v5124_v35  ;;  %v4057_v19 = vadd.f32 %v420_v10, %v407_v1  ;;  %1982 = vperm.xlu1 %2512, %v1968_v52   ;;  %v2448_v4 = vcvt.f32.s32 %v2447_v2 }
 0x10b   : > { %v423_v38 = vmul.f32 %v2548_v24, %v3975_v3  ;;  %v1578_v46 = vadd.f32 %v1576_v9, %v1572_v7  ;;  %v1589_v5 = vrot.slane %v1588_v34, 2  ;;  %v1600_v21 = vadd.f32 %v1576_v9, %v1573_v50  ;;  %v2022_v24 = vld [vmem:[%s5076_s4] sm:$0xff] }
 0x10c   : > { %v2550_v26 = vpop.eup %2549  ;;  %v2442_v31 = vcvt.f32.s32 %v2441_v18  ;;  %v1624_v14 = vand.u32 127, %v2448_v4 }
 0x10d   : > { %v432_v25 = vmul.f32 %v2550_v26, %v3998_v16  ;;  %v425_v8 = vsel %vm424_vm8, %v3975_v3, %v423_v38  ;;  %2551 = vrsqrt.f32 %v1578_v46  ;;  %v1591_v36 = vadd.f32 %v1589_v5, %v1572_v7  ;;  %v1967_v7 = vld [vmem:[%s5074_s2 + $0x8] sm:$0xff] }
 0x10e   : > { %1095 = vmatmul.mubr.bf16.gmra.mrb[4].mxu1 %v2515_v44  ;;  %v428_v32 = vsel %vm426_vm10, %v427_v27, %v425_v8  ;;  %2553 = vrsqrt.f32 %v1600_v21  ;;  %v1609_v3 = vadd.f32 %v1589_v5, %v1573_v50  ;;  %vm1581_vm13 = vcmp.eq.f32.partialorder %v1578_v46, inf  ;;  %1977 = vperm.xlu0 %2511, %v1967_v7  }
 0x10f   : > { %1149 = vmatprep.mubr.bf16.mxu1 %v5123_v53  ;;  %v434_v40 = vsel %vm433_vm11, %v3998_v16, %v432_v25  ;;  %v429_v15 = vsub.f32 1.42, %v428_v32  ;;  %2555 = vrsqrt.f32 %v1591_v36  ;;  %v445_v16 = vand.u32 127, %v2442_v31  ;;  %1987 = vperm.xlu1 %2512, %v1969_v37  }
 0x110   : > { %v437_v11 = vsel %vm435_vm12, %v436_v28, %v434_v40  ;;  %2557 = vrsqrt.f32 %v1609_v3  ;;  %v1584_v42 = vand.u32 2147483648, %v1578_v46  ;;  %vm1583_vm15 = vcmp.eq.f32.partialorder %v1578_v46, 0.0  ;;  %v2025_v40 = vld [vmem:[%s5076_s4 + $0x18] sm:$0xff] }
 0x111   : > { %1550 = vmatmul.mubr.bf16.gmra.mrb[4].mxu0 %v2516_v13  ;;  %v438_v23 = vsub.f32 1.42, %v437_v11  ;;  %v453_v60 = vrot.slane %v445_v16, %v2982_v29  ;;  %vm1603_vm1 = vcmp.eq.f32.partialorder %v1600_v21, inf  ;;  %v1606_v1 = vand.u32 2147483648, %v1600_v21  ;;  %v2023_v13 = vld [vmem:[%s5076_s4 + $0x8] sm:$0xff] }
 0x112   : > { %1937 = vmatprep.mubr.bf16.mxu0 %v5123_v53  ;;  %vm1594_vm2 = vcmp.eq.f32.partialorder %v1591_v36, inf  ;;  %v1597_v9 = vand.u32 2147483648, %v1591_v36  ;;  %vm1605_vm4 = vcmp.eq.f32.partialorder %v1600_v21, 0.0  ;;  %v449_v34 = vrot.slane %v445_v16, %v2991_v41  ;;  %2028 = vperm.xlu0 %2511, %v2022_v24  }
 0x113   : > { %v4059_v51 = vadd.f32 %v438_v23, %v429_v15  ;;  %vm1596_vm5 = vcmp.eq.f32.partialorder %v1591_v36, 0.0  ;;  %v4087_v26 = vrot.slane %v453_v60, %v2991_v41  ;;  %vm1612_vm7 = vcmp.eq.f32.partialorder %v1609_v3, inf  ;;  %2033 = vperm.xlu1 %2512, %v2023_v13   ;;  %v5125_v23 = vld [vmem:[#allocation13_spill] sm:$0xff] }
 0x114   : > { %v1615_v10 = vand.u32 2147483648, %v1609_v3  ;;  %vm1614_vm3 = vcmp.eq.f32.partialorder %v1609_v3, 0.0  ;;  %v4093_v32 = vrot.slane %v449_v34, %v2991_v41  ;;  %v1628_v16 = vrot.slane %v1624_v14, %v2991_v41 }
 0x115   : > { %v441_v12 = vadd.f32 %v4059_v51, %v4057_v19  ;;  %vm463_vm6 = vcmp.eq.s32.totalorder %v2913_v33, %v4087_v26  ;;  %vm465_vm9 = vcmp.eq.s32.totalorder %v5125_v23, %v4087_v26  ;;  %vm493_vm14 = vcmp.eq.s32.totalorder %v2998_v45, %v4087_v26 }
 0x116   : > { %vm462_vm8 = vcmp.eq.s32.totalorder %v2913_v33, %v4093_v32  ;;  %vm464_vm10 = vcmp.eq.s32.totalorder %v5125_v23, %v4093_v32  ;;  %vm5099_vm11 = vcmp.eq.s32.totalorder %v2998_v45, %v4093_v32  ;;  %vm467_vm12 = vcmp.eq.s32.totalorder %v3002_v47, %v4087_v26 }
 0x117   : > { %v442_v30 = vmax.f32 %v441_v12, 1e-12  ;;  %v2552_v20 = vpop.eup %2551  ;;  %v1632_v12 = vrot.slane %v1624_v14, %v2982_v29  ;;  %2043 = vperm.xlu1 %2512, %v2025_v40  }
 0x118   : > { %v1580_v17 = vmul.f32 %v2552_v20, %v1578_v46  ;;  %v2554_v50 = vpop.eup %2553 }
 0x119   : > { %2559 = vrcp.f32 %v442_v30  ;;  %v1602_v44 = vmul.f32 %v2554_v50, %v1600_v21  ;;  %v2556_v61 = vpop.eup %2555  ;;  %v4132_v50 = vrot.slane %v1628_v16, %v2991_v41 }
 0x11a   : > { %v1582_v22 = vsel %vm1581_vm13, %v1578_v46, %v1580_v17  ;;  %v1593_v27 = vmul.f32 %v2556_v61, %v1591_v36  ;;  %v2558_v38 = vpop.eup %2557  ;;  %vm469_vm13 = vcmp.eq.s32.totalorder %v3005_v48, %v4087_v26 }
 0x11b   : > { %v1585_v43 = vsel %vm1583_vm15, %v1584_v42, %v1582_v22  ;;  %v1604_v28 = vsel %vm1603_vm1, %v1600_v21, %v1602_v44  ;;  %v1611_v35 = vmul.f32 %v2558_v38, %v1609_v3  ;;  %v2024_v21 = vld [vmem:[%s5076_s4 + $0x10] sm:$0xff]  ;;  %v4128_v42 = vrot.slane %v1632_v12, %v2991_v41 }
 0x11c   : > { %v1595_v46 = vsel %vm1594_vm2, %v1591_v36, %v1593_v27  ;;  %v1607_v5 = vsel %vm1605_vm4, %v1606_v1, %v1604_v28  ;;  %v1586_v25 = vsub.f32 1.42, %v1585_v43  ;;  %2038 = vperm.xlu0 %2511, %v2024_v21   ;;  %v2240_v1 = vld [vmem:[#allocation2] sm:$0x1]  ;;  %vm466_vm15 = vcmp.eq.s32.totalorder %v3002_v47, %v4093_v32 }
 0x11d   : > { %v1598_v8 = vsel %vm1596_vm5, %v1597_v9, %v1595_v46  ;;  %v1608_v15 = vsub.f32 1.42, %v1607_v5  ;;  %v1613_v11 = vsel %vm1612_vm7, %v1609_v3, %v1611_v35  ;;  %v2133_v3 = vld [vmem:[%s5078_s6] sm:$0xf]  ;;  %vm468_vm1 = vcmp.eq.s32.totalorder %v3005_v48, %v4093_v32 }
 0x11e   : > { %v1599_v18 = vsub.f32 1.42, %v1598_v8  ;;  %v1616_v31 = vsel %vm1614_vm3, %v1615_v10, %v1613_v11  ;;  %vm471_vm2 = vcmp.eq.s32.totalorder %v3008_v49, %v4087_v26  ;;  %vm473_vm4 = vcmp.eq.s32.totalorder %v3017_v54, %v4087_v26 }
 0x11f   : > { %v1617_v30 = vsub.f32 1.42, %v1616_v31  ;;  %vm470_vm5 = vcmp.eq.s32.totalorder %v3008_v49, %v4093_v32  ;;  %vm472_vm7 = vcmp.eq.s32.totalorder %v3017_v54, %v4093_v32  ;;  %vm475_vm3 = vcmp.eq.s32.totalorder %v3020_v55, %v4087_v26 }
 0x120   : > { %v4106_v52 = vadd.f32 %v1599_v18, %v1586_v25  ;;  %2136 = vperm.xlu0 %2511, %v2133_v3  }
 0x121   : > { %v4124_v7 = vadd.f32 %v1617_v30, %v1608_v15 }
 0x123   : > { %v2560_v36 = vpop.eup %2559  ;;  %v1620_v22 = vadd.f32 %v4124_v7, %v4106_v52 }
 0x124   : > { %v494_v2 = vmul.f32 %v2560_v36, %v4057_v19  ;;  %v546_v39 = vmul.f32 %v2560_v36, %v4059_v51  ;;  %v2217_v19 = vld [vmem:[%s5079_s7] sm:$0xf]  ;;  %2243 = vperm.xlu0 %2511, %v2240_v1  }
 0x125   : > { %2220 = vperm.xlu1 %2512, %v2217_v19   ;;  %v1621_v14 = vmax.f32 %v1620_v22, 1e-12 }
 0x126   : > { %v503_v51 = vrot.slane %v494_v2, %v2982_v29  ;;  %v555_v20 = vrot.slane %v546_v39, %v2982_v29  ;;  %v499_v17 = vrot.slane %v494_v2, %v2991_v41  ;;  %v551_v37 = vrot.slane %v546_v39, %v2991_v41 }
 0x127   : > { %2561 = vrcp.f32 %v1621_v14 }
 0x128   : > { %v4137_v60 = vrot.slane %v503_v51, %v2991_v41  ;;  %v4140_v4 = vrot.slane %v555_v20, %v2991_v41  ;;  %v4145_v44 = vrot.slane %v499_v17, %v2991_v41  ;;  %v4148_v61 = vrot.slane %v551_v37, %v2991_v41 }
 0x12a   : > { %v515_v9 = vsel %vm463_vm6, %v4137_v60, 0.0  ;;  %v517_v34 = vsel %vm465_vm9, %v4137_v60, 0.0  ;;  %v567_v24 = vsel %vm463_vm6, %v4140_v4, 0.0  ;;  %v569_v43 = vsel %vm465_vm9, %v4140_v4, 0.0 }
 0x12b   : > { %v4178_v27 = vsel %vm493_vm14, %v4140_v4, 0.0  ;;  %v599_v28 = vrot.slane %v567_v24, 7  ;;  %v601_v13 = vrot.slane %v569_v43, 7  ;;  %v514_v46 = vsel %vm462_vm8, %v4145_v44, 0.0 }
 0x12c   : > { %v5102_v38 = vrot.slane %v4178_v27, 7  ;;  %v516_v5 = vsel %vm464_vm10, %v4145_v44, 0.0  ;;  %v566_v10 = vsel %vm462_vm8, %v4148_v61, 0.0  ;;  %v568_v8 = vsel %vm464_vm10, %v4148_v61, 0.0 }
 0x12d   : > { %v660_v25 = vsel %vm630_vm0, %v599_v28, %v601_v13  ;;  %v4205_v35 = vsel %vm5099_vm11, %v4148_v61, 0.0  ;;  %v598_v40 = vrot.slane %v566_v10, 7  ;;  %v600_v15 = vrot.slane %v568_v8, 7 }
 0x12e   : > { %v662_v21 = vsel %vm630_vm0, %v5102_v38, %v599_v28  ;;  %v666_v18 = vadd.f32 %v660_v25, %v517_v34  ;;  %v5100_v36 = vrot.slane %v4205_v35, 7  ;;  %v519_v31 = vsel %vm467_vm12, %v4137_v60, 0.0 }
 0x12f   : > { %v664_v11 = vadd.f32 %v662_v21, %v515_v9  ;;  %v521_v12 = vsel %vm469_vm13, %v4137_v60, 0.0  ;;  %v659_v16 = vsel %vm630_vm0, %v598_v40, %v600_v15  ;;  %v571_v2 = vsel %vm467_vm12, %v4140_v4, 0.0 }
 0x130   : > { %v573_v39 = vsel %vm469_vm13, %v4140_v4, 0.0  ;;  %v518_v30 = vsel %vm466_vm15, %v4145_v44, 0.0  ;;  %v661_v19 = vsel %vm630_vm0, %v5100_v36, %v598_v40  ;;  %v665_v51 = vadd.f32 %v659_v16, %v516_v5 }
 0x131   : > { %v700_v3 = vpack.c.bf16 %v666_v18, %v664_v11  ;;  %v603_v20 = vrot.slane %v571_v2, 7  ;;  %v663_v17 = vadd.f32 %v661_v19, %v514_v46  ;;  %v605_v37 = vrot.slane %v573_v39, 7  ;;  %v2562_v11 = vpop.eup %2561 }
 0x132   : > { %v520_v22 = vsel %vm468_vm1, %v4145_v44, 0.0  ;;  %v570_v1 = vsel %vm466_vm15, %v4148_v61, 0.0  ;;  %vm1642_vm6 = vcmp.eq.s32.totalorder %v2913_v33, %v4128_v42  ;;  %vm1644_vm9 = vcmp.eq.s32.totalorder %v5125_v23, %v4128_v42 }
 0x133   : > { %1117 = vmatprep.subr.bf16.mxu1 %v700_v3  ;;  %v658_v9 = vsel %vm630_vm0, %v601_v13, %v603_v20  ;;  %v572_v34 = vsel %vm468_vm1, %v4148_v61, 0.0  ;;  %v602_v24 = vrot.slane %v570_v1, 7  ;;  %v523_v43 = vsel %vm471_vm2, %v4137_v60, 0.0 }
 0x134   : > { %vm1672_vm8 = vcmp.eq.s32.totalorder %v2998_v45, %v4128_v42  ;;  %v699_v28 = vpack.c.bf16 %v665_v51, %v663_v17  ;;  %v656_v14 = vsel %vm630_vm0, %v603_v20, %v605_v37  ;;  %v668_v46 = vadd.f32 %v658_v9, %v519_v31 }
 0x135   : > { %v604_v13 = vrot.slane %v572_v34, 7  ;;  %vm477_vm10 = vcmp.eq.s32.totalorder %v3023_v56, %v4087_v26  ;;  %vm1641_vm12 = vcmp.eq.s32.totalorder %v2913_v33, %v4132_v50  ;;  %vm1643_vm13 = vcmp.eq.s32.totalorder %v5125_v23, %v4132_v50 }
 0x136   : > { %v670_v5 = vadd.f32 %v656_v14, %v521_v12  ;;  %v657_v10 = vsel %vm630_vm0, %v600_v15, %v602_v24  ;;  %v525_v25 = vsel %vm473_vm4, %v4137_v60, 0.0  ;;  %v575_v8 = vsel %vm471_vm2, %v4140_v4, 0.0  ;;  %1118 = vmatpush1.bf16.msra.mxu1 %v699_v28 }
 0x137   : > { %vm1671_vm15 = vcmp.eq.s32.totalorder %v2998_v45, %v4132_v50  ;;  %v655_v21 = vsel %vm630_vm0, %v602_v24, %v604_v13  ;;  %v667_v18 = vadd.f32 %v657_v10, %v518_v30  ;;  %v4294_v40 = vsel %vm473_vm4, %v4140_v4, 0.0 }
 0x138   : > { %v607_v15 = vrot.slane %v575_v8, 7  ;;  %v702_v31 = vpack.c.bf16 %v670_v5, %v668_v46  ;;  %v669_v12 = vadd.f32 %v655_v21, %v520_v22  ;;  %v5103_v16 = vrot.slane %v4294_v40, 7 }
 0x139   : > { %v4301_v2 = vsel %vm470_vm5, %v4145_v44, 0.0  ;;  %v1673_v39 = vmul.f32 %v2562_v11, %v4106_v52  ;;  %v1725_v30 = vmul.f32 %v2562_v11, %v4124_v7  ;;  %vm1646_vm1 = vcmp.eq.s32.totalorder %v3002_v47, %v4128_v42 }
 0x13a   : > { %v654_v3 = vsel %vm630_vm0, %v605_v37, %v607_v15  ;;  %v4313_v19 = vsel %vm472_vm7, %v4145_v44, 0.0  ;;  %1119 = vmatprep.subr.bf16.mxu1 %v702_v31  ;;  %vm1648_vm2 = vcmp.eq.s32.totalorder %v3005_v48, %v4128_v42  ;;  %v701_v51 = vpack.c.bf16 %v669_v12, %v667_v18 }
 0x13b   : > { %v652_v52 = vsel %vm630_vm0, %v607_v15, %v5103_v16  ;;  %v672_v7 = vadd.f32 %v654_v3, %v523_v43  ;;  %v4325_v20 = vsel %vm470_vm5, %v4148_v61, 0.0  ;;  %v1682_v17 = vrot.slane %v1673_v39, %v2982_v29 }
 0x13c   : > { %v1734_v37 = vrot.slane %v1725_v30, %v2982_v29  ;;  %v1678_v22 = vrot.slane %v1673_v39, %v2991_v41  ;;  %v1730_v1 = vrot.slane %v1725_v30, %v2991_v41  ;;  %1120 = vmatpush1.bf16.msra.mxu1 %v701_v51  ;;  %vm1645_vm4 = vcmp.eq.s32.totalorder %v3002_v47, %v4132_v50 }
 0x13d   : > { %vm1647_vm11 = vcmp.eq.s32.totalorder %v3005_v48, %v4132_v50  ;;  %v674_v9 = vadd.f32 %v652_v52, %v525_v25  ;;  %v4339_v34 = vsel %vm472_vm7, %v4148_v61, 0.0  ;;  %v606_v29 = vrot.slane %v4325_v20, 7 }
 0x13e   : > { %v4346_v24 = vsel %vm475_vm3, %v4137_v60, 0.0  ;;  %v4349_v43 = vrot.slane %v1682_v17, %v2991_v41  ;;  %v4352_v28 = vrot.slane %v1734_v37, %v2991_v41  ;;  %v4355_v14 = vrot.slane %v1678_v22, %v2991_v41 }
 0x13f   : > { %v4358_v46 = vrot.slane %v1730_v1, %v2991_v41  ;;  %v704_v5 = vpack.c.bf16 %v674_v9, %v672_v7  ;;  %v608_v10 = vrot.slane %v4339_v34, 7  ;;  %v4365_v25 = vsel %vm630_vm0, %v604_v13, %v606_v29 }
 0x140   : > { %v4371_v8 = vsel %vm477_vm10, %v4137_v60, 0.0  ;;  %v1694_v21 = vsel %vm1642_vm6, %v4349_v43, 0.0  ;;  %v1696_v18 = vsel %vm1644_vm9, %v4349_v43, 0.0  ;;  %v1746_v13 = vsel %vm1642_vm6, %v4352_v28, 0.0 }
 0x141   : > { %v1748_v15 = vsel %vm1644_vm9, %v4352_v28, 0.0  ;;  %vm1650_vm5 = vcmp.eq.s32.totalorder %v3008_v49, %v4128_v42  ;;  %vm1652_vm7 = vcmp.eq.s32.totalorder %v3017_v54, %v4128_v42  ;;  %v4397_v11 = vsel %vm1672_vm8, %v4352_v28, 0.0  ;;  %1121 = vmatprep.subr.bf16.mxu1 %v704_v5 }
 0x142   : > { %v1778_v31 = vrot.slane %v1746_v13, 7  ;;  %v1780_v12 = vrot.slane %v1748_v15, 7  ;;  %v1693_v39 = vsel %vm1641_vm12, %v4355_v14, 0.0  ;;  %v5101_v30 = vrot.slane %v4397_v11, 7 }
 0x143   : > { %v1695_v3 = vsel %vm1643_vm13, %v4355_v14, 0.0  ;;  %v1745_v51 = vsel %vm1641_vm12, %v4358_v46, 0.0  ;;  %v1747_v52 = vsel %vm1643_vm13, %v4358_v46, 0.0  ;;  %v4422_v17 = vsel %vm1671_vm15, %v4358_v46, 0.0 }
 0x144   : > { %v1838_v7 = vsel %vm630_vm0, %v1778_v31, %v1780_v12  ;;  %v1777_v37 = vrot.slane %v1745_v51, 7  ;;  %v1779_v22 = vrot.slane %v1747_v52, 7  ;;  %vm1649_vm6 = vcmp.eq.s32.totalorder %v3008_v49, %v4132_v50 }
 0x145   : > { %v1840_v23 = vsel %vm630_vm0, %v5101_v30, %v1778_v31  ;;  %v1844_v1 = vadd.f32 %v1838_v7, %v1696_v18  ;;  %v1807_v9 = vrot.slane %v4422_v17, 7  ;;  %v1698_v5 = vsel %vm1646_vm1, %v4349_v43, 0.0  ;;  %v2520_v17 = vld [vmem:[%s5073_s1 + $0x2c] ss:$16 sps:$4 sm:$0xff]  }
 0x146   : > { %v1842_v13 = vadd.f32 %v1840_v23, %v1694_v21  ;;  %v1837_v15 = vsel %vm630_vm0, %v1777_v37, %v1779_v22  ;;  %v1700_v51 = vsel %vm1648_vm2, %v4349_v43, 0.0  ;;  %v1750_v18 = vsel %vm1646_vm1, %v4352_v28, 0.0 }
 0x147   : > { %vm1651_vm9 = vcmp.eq.s32.totalorder %v3017_v54, %v4132_v50  ;;  %v1839_v21 = vsel %vm630_vm0, %v1807_v9, %v1777_v37  ;;  %v1843_v31 = vadd.f32 %v1837_v15, %v1695_v3  ;;  %v1752_v52 = vsel %vm1648_vm2, %v4352_v28, 0.0 }
 0x148   : > { %v1782_v7 = vrot.slane %v1750_v18, 7  ;;  %v1878_v23 = vpack.c.bf16 %v1844_v1, %v1842_v13  ;;  %v1841_v36 = vadd.f32 %v1839_v21, %v1693_v39  ;;  %v1784_v30 = vrot.slane %v1752_v52, 7 }
 0x149   : > { %v1697_v38 = vsel %vm1645_vm4, %v4355_v14, 0.0  ;;  %v1699_v3 = vsel %vm1647_vm11, %v4355_v14, 0.0  ;;  %v1749_v37 = vsel %vm1645_vm4, %v4358_v46, 0.0  ;;  %v1751_v39 = vsel %vm1647_vm11, %v4358_v46, 0.0 }
 0x14a   : > { %v1836_v16 = vsel %vm630_vm0, %v1780_v12, %v1782_v7  ;;  %vm1654_vm12 = vcmp.eq.s32.totalorder %v3020_v55, %v4128_v42  ;;  %1905 = vmatprep.subr.bf16.mxu0 %v1878_v23  ;;  %v1877_v12 = vpack.c.bf16 %v1843_v31, %v1841_v36  ;;  %v1834_v1 = vsel %vm630_vm0, %v1782_v7, %v1784_v30 }
 0x14b   : > { %v1846_v13 = vadd.f32 %v1836_v16, %v1698_v5  ;;  %v1781_v15 = vrot.slane %v1749_v37, 7  ;;  %vm1656_vm13 = vcmp.eq.s32.totalorder %v3023_v56, %v4128_v42  ;;  %v1848_v47 = vadd.f32 %v1834_v1, %v1700_v51 }
 0x14c   : > { %v1783_v18 = vrot.slane %v1751_v39, 7  ;;  %v1702_v48 = vsel %vm1650_vm5, %v4349_v43, 0.0  ;;  %v1704_v36 = vsel %vm1652_vm7, %v4349_v43, 0.0  ;;  %1906 = vmatpush1.bf16.msra.mxu0 %v1877_v12  ;;  %v1754_v5 = vsel %vm1650_vm5, %v4352_v28, 0.0 }
 0x14d   : > { %v1835_v16 = vsel %vm630_vm0, %v1779_v22, %v1781_v15  ;;  %v4497_v51 = vsel %vm1652_vm7, %v4352_v28, 0.0  ;;  %v651_v21 = vsel %vm630_vm0, %v606_v29, %v608_v10  ;;  %vm474_vm11 = vcmp.eq.s32.totalorder %v3020_v55, %v4093_v32 }
 0x14e   : > { %vm476_vm1 = vcmp.eq.s32.totalorder %v3023_v56, %v4093_v32  ;;  %v1880_v22 = vpack.c.bf16 %v1848_v47, %v1846_v13  ;;  %v1833_v31 = vsel %vm630_vm0, %v1781_v15, %v1783_v18  ;;  %v1845_v52 = vadd.f32 %v1835_v16, %v1697_v38 }
 0x14f   : > { %v1786_v7 = vrot.slane %v1754_v5, 7  ;;  %v1847_v23 = vadd.f32 %v1833_v31, %v1699_v3  ;;  %v1788_v37 = vrot.slane %v4497_v51, 7  ;;  %v671_v20 = vadd.f32 %v4365_v25, %v4301_v2 }
 0x150   : > { %v673_v29 = vadd.f32 %v651_v21, %v4313_v19  ;;  %1907 = vmatprep.subr.bf16.mxu0 %v1880_v22  ;;  %v1701_v12 = vsel %vm1649_vm6, %v4355_v14, 0.0  ;;  %v1703_v38 = vsel %vm1651_vm9, %v4355_v14, 0.0  ;;  %v1753_v2 = vsel %vm1649_vm6, %v4358_v46, 0.0 }
 0x151   : > { %v1832_v39 = vsel %vm630_vm0, %v1784_v30, %v1786_v7  ;;  %vm1653_vm2 = vcmp.eq.s32.totalorder %v3020_v55, %v4132_v50  ;;  %vm1655_vm4 = vcmp.eq.s32.totalorder %v3023_v56, %v4132_v50  ;;  %v1879_v19 = vpack.c.bf16 %v1847_v23, %v1845_v52 }
 0x152   : > { %v1830_v25 = vsel %vm630_vm0, %v1786_v7, %v1788_v37  ;;  %v1850_v30 = vadd.f32 %v1832_v39, %v1702_v48  ;;  %v703_v3 = vpack.c.bf16 %v673_v29, %v671_v20  ;;  %v4539_v13 = vsel %vm1651_vm9, %v4358_v46, 0.0 }
 0x153   : > { %v1852_v1 = vadd.f32 %v1830_v25, %v1704_v36  ;;  %v1785_v49 = vrot.slane %v1753_v2, 7  ;;  %v579_v15 = vsel %vm475_vm3, %v4140_v4, 0.0  ;;  %1908 = vmatpush1.bf16.msra.mxu0 %v1879_v19  ;;  %v1787_v47 = vrot.slane %v4539_v13, 7 }
 0x154   : > { %1122 = vmatpush1.bf16.msra.mxu1 %v703_v3  ;;  %v4550_v48 = vsel %vm477_vm10, %v4140_v4, 0.0  ;;  %v611_v36 = vrot.slane %v579_v15, 7  ;;  %v1706_v54 = vsel %vm1654_vm12, %v4349_v43, 0.0  ;;  %vm479_vm5 = vcmp.eq.s32.totalorder %v3026_v57, %v4087_v26 }
 0x155   : > { %vm481_vm3 = vcmp.eq.s32.totalorder %v3029_v58, %v4087_v26  ;;  %v1882_v16 = vpack.c.bf16 %v1852_v1, %v1850_v30  ;;  %v1831_v5 = vsel %vm630_vm0, %v1783_v18, %v1785_v49  ;;  %v613_v51 = vrot.slane %v4550_v48, 7 }
 0x156   : > { %v1708_v21 = vsel %vm1656_vm13, %v4349_v43, 0.0  ;;  %v1829_v22 = vsel %vm630_vm0, %v1785_v49, %v1787_v47  ;;  %v1849_v31 = vadd.f32 %v1831_v5, %v1701_v12  ;;  %v5126_v52 = vrot.slane %v4294_v40, 7 }
 0x157   : > { %v1758_v18 = vsel %vm1654_vm12, %v4352_v28, 0.0  ;;  %vm1658_vm10 = vcmp.eq.s32.totalorder %v3026_v57, %v4128_v42  ;;  %1909 = vmatprep.subr.bf16.mxu0 %v1882_v16  ;;  %v1851_v23 = vadd.f32 %v1829_v22, %v1703_v38  ;;  %v648_v20 = vsel %vm630_vm0, %v611_v36, %v613_v51 }
 0x158   : > { %v650_v7 = vsel %vm630_vm0, %v5126_v52, %v611_v36  ;;  %v4588_v29 = vsel %vm1656_vm13, %v4352_v28, 0.0  ;;  %vm1660_vm7 = vcmp.eq.s32.totalorder %v3029_v58, %v4128_v42  ;;  %v678_v39 = vadd.f32 %v648_v20, %v4371_v8 }
 0x159   : > { %v676_v40 = vadd.f32 %v650_v7, %v4346_v24  ;;  %v1790_v12 = vrot.slane %v1758_v18, 7  ;;  %v1792_v38 = vrot.slane %v4588_v29, 7  ;;  %v526_v2 = vsel %vm474_vm11, %v4145_v44, 0.0 }
 0x15a   : > { %v1881_v24 = vpack.c.bf16 %v1851_v23, %v1849_v31  ;;  %v528_v19 = vsel %vm476_vm1, %v4145_v44, 0.0  ;;  %v578_v25 = vsel %vm474_vm11, %v4148_v61, 0.0  ;;  %v4610_v8 = vsel %vm476_vm1, %v4148_v61, 0.0 }
 0x15b   : > { %vm478_vm6 = vcmp.eq.s32.totalorder %v3026_v57, %v4093_v32  ;;  %v706_v30 = vpack.c.bf16 %v678_v39, %v676_v40  ;;  %v1826_v3 = vsel %vm630_vm0, %v1790_v12, %v1792_v38  ;;  %v1828_v1 = vsel %vm630_vm0, %v1788_v37, %v1790_v12 }
 0x15c   : > { %v610_v13 = vrot.slane %v578_v25, 7  ;;  %vm480_vm9 = vcmp.eq.s32.totalorder %v3029_v58, %v4093_v32  ;;  %1910 = vmatpush1.bf16.msra.mxu0 %v1881_v24  ;;  %v1854_v49 = vadd.f32 %v1828_v1, %v1706_v54  ;;  %v1856_v15 = vadd.f32 %v1826_v3, %v1708_v21 }
 0x15d   : > { %v612_v36 = vrot.slane %v4610_v8, 7  ;;  %v1705_v16 = vsel %vm1653_vm2, %v4355_v14, 0.0  ;;  %1123 = vmatprep.subr.bf16.mxu1 %v706_v30  ;;  %v1707_v5 = vsel %vm1655_vm4, %v4355_v14, 0.0  ;;  %v1757_v54 = vsel %vm1653_vm2, %v4358_v46, 0.0 }
 0x15e   : > { %v649_v37 = vsel %vm630_vm0, %v608_v10, %v610_v13  ;;  %v4641_v21 = vsel %vm1655_vm4, %v4358_v46, 0.0  ;;  %vm1657_vm12 = vcmp.eq.s32.totalorder %v3026_v57, %v4132_v50  ;;  %vm1659_vm13 = vcmp.eq.s32.totalorder %v3029_v58, %v4132_v50 }
 0x15f   : > { %v1884_v34 = vpack.c.bf16 %v1856_v15, %v1854_v49  ;;  %v647_v10 = vsel %vm630_vm0, %v610_v13, %v612_v36  ;;  %v675_v22 = vadd.f32 %v649_v37, %v526_v2  ;;  %v1789_v31 = vrot.slane %v1757_v54, 7 }
 0x160   : > { %v677_v55 = vadd.f32 %v647_v10, %v528_v19  ;;  %v1791_v52 = vrot.slane %v4641_v21, 7  ;;  %v531_v56 = vsel %vm479_vm5, %v4137_v60, 0.0  ;;  %v533_v7 = vsel %vm481_vm3, %v4137_v60, 0.0 }
 0x161   : > { %1911 = vmatprep.subr.bf16.mxu0 %v1884_v34  ;;  %v1827_v18 = vsel %vm630_vm0, %v1787_v47, %v1789_v31  ;;  %v583_v23 = vsel %vm479_vm5, %v4140_v4, 0.0  ;;  %v4668_v20 = vsel %vm481_vm3, %v4140_v4, 0.0  ;;  %v1710_v40 = vsel %vm1658_vm10, %v4349_v43, 0.0 }
 0x162   : > { %vm483_vm11 = vcmp.eq.s32.totalorder %v3032_v59, %v4087_v26  ;;  %vm485_vm1 = vcmp.eq.s32.totalorder %v3039_v62, %v4087_v26  ;;  %v705_v47 = vpack.c.bf16 %v677_v55, %v675_v22  ;;  %v1825_v29 = vsel %vm630_vm0, %v1789_v31, %v1791_v52 }
 0x163   : > { %v1853_v39 = vadd.f32 %v1827_v18, %v1705_v16  ;;  %v615_v12 = vrot.slane %v583_v23, 7  ;;  %v1855_v2 = vadd.f32 %v1825_v29, %v1707_v5  ;;  %v617_v24 = vrot.slane %v4668_v20, 7 }
 0x164   : > { %v1712_v19 = vsel %vm1660_vm7, %v4349_v43, 0.0  ;;  %v1762_v25 = vsel %vm1658_vm10, %v4352_v28, 0.0  ;;  %vm1662_vm2 = vcmp.eq.s32.totalorder %v3032_v59, %v4128_v42  ;;  %1124 = vmatpush1.bf16.msra.mxu1 %v705_v47  ;;  %v4699_v30 = vsel %vm1660_vm7, %v4352_v28, 0.0 }
 0x165   : > { %v646_v8 = vsel %vm630_vm0, %v613_v51, %v615_v12  ;;  %v1794_v3 = vrot.slane %v1762_v25, 7  ;;  %v530_v1 = vsel %vm478_vm6, %v4145_v44, 0.0  ;;  %vm1664_vm4 = vcmp.eq.s32.totalorder %v3039_v62, %v4128_v42 }
 0x166   : > { %v1883_v13 = vpack.c.bf16 %v1855_v2, %v1853_v39  ;;  %v644_v48 = vsel %vm630_vm0, %v615_v12, %v617_v24  ;;  %v680_v51 = vadd.f32 %v646_v8, %v531_v56  ;;  %v1796_v49 = vrot.slane %v4699_v30, 7 }
 0x167   : > { %v682_v15 = vadd.f32 %v644_v48, %v533_v7  ;;  %v1824_v16 = vsel %vm630_vm0, %v1792_v38, %v1794_v3  ;;  %v532_v37 = vsel %vm480_vm9, %v4145_v44, 0.0  ;;  %v582_v5 = vsel %vm478_vm6, %v4148_v61, 0.0 }
 0x168   : > { %vm482_vm5 = vcmp.eq.s32.totalorder %v3032_v59, %v4093_v32  ;;  %1912 = vmatpush1.bf16.msra.mxu0 %v1883_v13  ;;  %v1822_v54 = vsel %vm630_vm0, %v1794_v3, %v1796_v49  ;;  %v1858_v21 = vadd.f32 %v1824_v16, %v1710_v40  ;;  %v4728_v38 = vsel %vm480_vm9, %v4148_v61, 0.0 }
 0x169   : > { %v614_v34 = vrot.slane %v582_v5, 7  ;;  %vm484_vm3 = vcmp.eq.s32.totalorder %v3039_v62, %v4093_v32  ;;  %v708_v10 = vpack.c.bf16 %v682_v15, %v680_v51  ;;  %v1860_v22 = vadd.f32 %v1822_v54, %v1712_v19 }
 0x16a   : > { %v616_v31 = vrot.slane %v4728_v38, 7  ;;  %v1709_v55 = vsel %vm1657_vm12, %v4355_v14, 0.0  ;;  %v1711_v7 = vsel %vm1659_vm13, %v4355_v14, 0.0  ;;  %v1761_v18 = vsel %vm1657_vm12, %v4358_v46, 0.0 }
 0x16b   : > { %v645_v56 = vsel %vm630_vm0, %v612_v36, %v614_v34  ;;  %v4751_v23 = vsel %vm1659_vm13, %v4358_v46, 0.0  ;;  %vm1661_vm10 = vcmp.eq.s32.totalorder %v3032_v59, %v4132_v50  ;;  %vm1663_vm7 = vcmp.eq.s32.totalorder %v3039_v62, %v4132_v50  ;;  %1125 = vmatprep.subr.bf16.mxu1 %v708_v10 }
 0x16c   : > { %v1886_v36 = vpack.c.bf16 %v1860_v22, %v1858_v21  ;;  %v643_v20 = vsel %vm630_vm0, %v614_v34, %v616_v31  ;;  %v679_v40 = vadd.f32 %v645_v56, %v530_v1  ;;  %v1793_v57 = vrot.slane %v1761_v18, 7 }
 0x16d   : > { %v681_v47 = vadd.f32 %v643_v20, %v532_v37  ;;  %v1795_v29 = vrot.slane %v4751_v23, 7  ;;  %v535_v58 = vsel %vm483_vm11, %v4137_v60, 0.0  ;;  %v537_v39 = vsel %vm485_vm1, %v4137_v60, 0.0 }
 0x16e   : > { %1913 = vmatprep.subr.bf16.mxu0 %v1886_v36  ;;  %v1823_v12 = vsel %vm630_vm0, %v1791_v52, %v1793_v57  ;;  %v587_v2 = vsel %vm483_vm11, %v4140_v4, 0.0  ;;  %v4778_v19 = vsel %vm485_vm1, %v4140_v4, 0.0  ;;  %v1714_v25 = vsel %vm1662_vm2, %v4349_v43, 0.0 }
 0x16f   : > { %vm487_vm6 = vcmp.eq.s32.totalorder %v3042_v63, %v4087_v26  ;;  %vm489_vm9 = vcmp.eq.s32.totalorder %v3046_v0, %v4087_v26  ;;  %v707_v52 = vpack.c.bf16 %v681_v47, %v679_v40  ;;  %v1821_v8 = vsel %vm630_vm0, %v1793_v57, %v1795_v29 }
 0x170   : > { %v1857_v30 = vadd.f32 %v1823_v12, %v1709_v55  ;;  %v619_v3 = vrot.slane %v587_v2, 7  ;;  %v1859_v1 = vadd.f32 %v1821_v8, %v1711_v7  ;;  %v621_v13 = vrot.slane %v4778_v19, 7 }
 0x171   : > { %v1716_v48 = vsel %vm1664_vm4, %v4349_v43, 0.0  ;;  %v1766_v51 = vsel %vm1662_vm2, %v4352_v28, 0.0  ;;  %vm1666_vm12 = vcmp.eq.s32.totalorder %v3042_v63, %v4128_v42  ;;  %1126 = vmatpush1.bf16.msra.mxu1 %v707_v52  ;;  %v1768_v16 = vsel %vm1664_vm4, %v4352_v28, 0.0 }
 0x172   : > { %v642_v15 = vsel %vm630_vm0, %v617_v24, %v619_v3  ;;  %v1798_v37 = vrot.slane %v1766_v51, 7  ;;  %v534_v5 = vsel %vm482_vm5, %v4145_v44, 0.0  ;;  %vm1668_vm13 = vcmp.eq.s32.totalorder %v3046_v0, %v4128_v42 }
 0x173   : > { %v1885_v54 = vpack.c.bf16 %v1859_v1, %v1857_v30  ;;  %v640_v21 = vsel %vm630_vm0, %v619_v3, %v621_v13  ;;  %v684_v38 = vadd.f32 %v642_v15, %v535_v58  ;;  %v1800_v24 = vrot.slane %v1768_v16, 7 }
 0x174   : > { %v686_v34 = vadd.f32 %v640_v21, %v537_v39  ;;  %v1820_v10 = vsel %vm630_vm0, %v1796_v49, %v1798_v37  ;;  %v536_v22 = vsel %vm484_vm3, %v4145_v44, 0.0  ;;  %v586_v55 = vsel %vm482_vm5, %v4148_v61, 0.0 }
 0x175   : > { %vm486_vm11 = vcmp.eq.s32.totalorder %v3042_v63, %v4093_v32  ;;  %1914 = vmatpush1.bf16.msra.mxu0 %v1885_v54  ;;  %v1818_v56 = vsel %vm630_vm0, %v1798_v37, %v1800_v24  ;;  %v1862_v7 = vadd.f32 %v1820_v10, %v1714_v25  ;;  %v588_v49 = vsel %vm484_vm3, %v4148_v61, 0.0 }
 0x176   : > { %v618_v18 = vrot.slane %v586_v55, 7  ;;  %vm488_vm1 = vcmp.eq.s32.totalorder %v3046_v0, %v4093_v32  ;;  %v710_v23 = vpack.c.bf16 %v686_v34, %v684_v38  ;;  %v1864_v36 = vadd.f32 %v1818_v56, %v1716_v48 }
 0x177   : > { %v620_v20 = vrot.slane %v588_v49, 7  ;;  %v1713_v40 = vsel %vm1661_vm10, %v4355_v14, 0.0  ;;  %v1715_v47 = vsel %vm1663_vm7, %v4355_v14, 0.0  ;;  %v1765_v58 = vsel %vm1661_vm10, %v4358_v46, 0.0 }
 0x178   : > { %v641_v57 = vsel %vm630_vm0, %v616_v31, %v618_v18  ;;  %v4853_v39 = vsel %vm1663_vm7, %v4358_v46, 0.0  ;;  %vm1665_vm2 = vcmp.eq.s32.totalorder %v3042_v63, %v4132_v50  ;;  %1127 = vmatprep.subr.bf16.mxu1 %v710_v23  ;;  %v1888_v31 = vpack.c.bf16 %v1864_v36, %v1862_v7 }
 0x179   : > { %v639_v12 = vsel %vm630_vm0, %v618_v18, %v620_v20  ;;  %v683_v2 = vadd.f32 %v641_v57, %v534_v5  ;;  %v1797_v19 = vrot.slane %v1765_v58, 7  ;;  %v1799_v59 = vrot.slane %v4853_v39, 7 }
 0x17a   : > { %v685_v25 = vadd.f32 %v639_v12, %v536_v22  ;;  %v539_v62 = vsel %vm487_vm6, %v4137_v60, 0.0  ;;  %v541_v52 = vsel %vm489_vm9, %v4137_v60, 0.0  ;;  %1915 = vmatprep.subr.bf16.mxu0 %v1888_v31  ;;  %v591_v30 = vsel %vm487_vm6, %v4140_v4, 0.0 }
 0x17b   : > { %v1819_v8 = vsel %vm630_vm0, %v1795_v29, %v1797_v19  ;;  %v593_v3 = vsel %vm489_vm9, %v4140_v4, 0.0  ;;  %v1718_v1 = vsel %vm1666_vm12, %v4349_v43, 0.0  ;;  %v1817_v51 = vsel %vm630_vm0, %v1797_v19, %v1799_v59 }
 0x17c   : > { %v709_v48 = vpack.c.bf16 %v685_v25, %v683_v2  ;;  %v1861_v29 = vadd.f32 %v1819_v8, %v1713_v40  ;;  %v623_v15 = vrot.slane %v591_v30, 7  ;;  %v1863_v16 = vadd.f32 %v1817_v51, %v1715_v47 }
 0x17d   : > { %v625_v37 = vrot.slane %v593_v3, 7  ;;  %v1720_v5 = vsel %vm1668_vm13, %v4349_v43, 0.0  ;;  %v1770_v54 = vsel %vm1666_vm12, %v4352_v28, 0.0  ;;  %v4898_v38 = vsel %vm1668_vm13, %v4352_v28, 0.0 }
 0x17e   : > { %1128 = vmatpush1.bf16.msra.mxu1 %v709_v48  ;;  %v638_v21 = vsel %vm630_vm0, %v621_v13, %v623_v15  ;;  %v1802_v34 = vrot.slane %v1770_v54, 7  ;;  %v538_v10 = vsel %vm486_vm11, %v4145_v44, 0.0  ;;  %v1887_v22 = vpack.c.bf16 %v1863_v16, %v1861_v29 }
 0x17f   : > { %v636_v55 = vsel %vm630_vm0, %v623_v15, %v625_v37  ;;  %v688_v56 = vadd.f32 %v638_v21, %v539_v62  ;;  %v1804_v7 = vrot.slane %v4898_v38, 7  ;;  %v540_v18 = vsel %vm488_vm1, %v4145_v44, 0.0 }
 0x180   : > { %v690_v13 = vadd.f32 %v636_v55, %v541_v52  ;;  %v1816_v49 = vsel %vm630_vm0, %v1800_v24, %v1802_v34  ;;  %v590_v23 = vsel %vm486_vm11, %v4148_v61, 0.0  ;;  %1916 = vmatpush1.bf16.msra.mxu0 %v1887_v22  ;;  %v592_v24 = vsel %vm488_vm1, %v4148_v61, 0.0 }
 0x181   : > { %v1814_v36 = vsel %vm630_vm0, %v1802_v34, %v1804_v7  ;;  %v1866_v40 = vadd.f32 %v1816_v49, %v1718_v1  ;;  %v622_v57 = vrot.slane %v590_v23, 7  ;;  %v624_v39 = vrot.slane %v592_v24, 7 }
 0x182   : > { %v712_v47 = vpack.c.bf16 %v690_v13, %v688_v56  ;;  %v1868_v58 = vadd.f32 %v1814_v36, %v1720_v5  ;;  %vm1667_vm4 = vcmp.eq.s32.totalorder %v3046_v0, %v4132_v50  ;;  %v1717_v12 = vsel %vm1665_vm2, %v4355_v14, 0.0 }
 0x183   : > { %v637_v31 = vsel %vm630_vm0, %v620_v20, %v622_v57  ;;  %v1719_v2 = vsel %vm1667_vm4, %v4355_v14, 0.0  ;;  %v1769_v19 = vsel %vm1665_vm2, %v4358_v46, 0.0  ;;  %v635_v0 = vsel %vm630_vm0, %v622_v57, %v624_v39 }
 0x184   : > { %1129 = vmatprep.subr.bf16.mxu1 %v712_v47  ;;  %v1890_v25 = vpack.c.bf16 %v1868_v58, %v1866_v40  ;;  %v687_v62 = vadd.f32 %v637_v31, %v538_v10  ;;  %v1771_v20 = vsel %vm1667_vm4, %v4358_v46, 0.0  ;;  %v689_v52 = vadd.f32 %v635_v0, %v540_v18  ;;  %v1973_v31 = vpop.permute.xlu0 %1972 }
 0x185   : > { %v1801_v8 = vrot.slane %v1769_v19, 7  ;;  %v1803_v30 = vrot.slane %v1771_v20, 7  ;;  %vm491_vm5 = vcmp.eq.s32.totalorder %v3057_v6, %v4087_v26  ;;  %v545_v63 = vsel %vm493_vm14, %v4137_v60, 0.0 }
 0x186   : > { %1917 = vmatprep.subr.bf16.mxu0 %v1890_v25  ;;  %v543_v3 = vsel %vm491_vm5, %v4137_v60, 0.0  ;;  %v595_v1 = vsel %vm491_vm5, %v4140_v4, 0.0  ;;  %vm1670_vm3 = vcmp.eq.s32.totalorder %v3057_v6, %v4128_v42  ;;  %v711_v48 = vpack.c.bf16 %v689_v52, %v687_v62 }
 0x187   : > { %v1813_v51 = vsel %vm630_vm0, %v1801_v8, %v1803_v30  ;;  %v1815_v29 = vsel %vm630_vm0, %v1799_v59, %v1801_v8  ;;  %v627_v15 = vrot.slane %v595_v1, 7  ;;  %v1722_v54 = vsel %vm1670_vm3, %v4349_v43, 0.0 }
 0x188   : > { %v1865_v16 = vadd.f32 %v1815_v29, %v1717_v12  ;;  %v1867_v5 = vadd.f32 %v1813_v51, %v1719_v2  ;;  %v1724_v26 = vsel %vm1672_vm8, %v4349_v43, 0.0  ;;  %1130 = vmatpush1.bf16.msra.mxu1 %v711_v48  ;;  %v5127_v60 = vrot.slane %v4178_v27, 7 }
 0x189   : > { %v634_v21 = vsel %vm630_vm0, %v625_v37, %v627_v15  ;;  %v1774_v59 = vsel %vm1670_vm3, %v4352_v28, 0.0  ;;  %vm490_vm14 = vcmp.eq.s32.totalorder %v3057_v6, %v4093_v32  ;;  %vm5128_vm8 = vcmp.eq.s32.totalorder %v2998_v45, %v4093_v32  ;;  %v2517_v45 = vld [vmem:[%s5073_s1] ss:$16 sps:$4 sm:$0xff]  }
 0x18a   : > { %v632_v4 = vsel %vm630_vm0, %v627_v15, %v5127_v60  ;;  %v1889_v38 = vpack.c.bf16 %v1867_v5, %v1865_v16  ;;  %v692_v34 = vadd.f32 %v634_v21, %v543_v3  ;;  %v1806_v22 = vrot.slane %v1774_v59, 7 }
 0x18b   : > { %v694_v10 = vadd.f32 %v632_v4, %v545_v63  ;;  %v542_v42 = vsel %vm490_vm14, %v4145_v44, 0.0  ;;  %v544_v27 = vsel %vm5128_vm8, %v4145_v44, 0.0  ;;  %v594_v43 = vsel %vm490_vm14, %v4148_v61, 0.0 }
 0x18c   : > { %vm1669_vm10 = vcmp.eq.s32.totalorder %v3057_v6, %v4132_v50  ;;  %1918 = vmatpush1.bf16.msra.mxu0 %v1889_v38  ;;  %v5129_v37 = vrot.slane %v4397_v11, 7  ;;  %v1812_v56 = vsel %vm630_vm0, %v1804_v7, %v1806_v22  ;;  %v626_v13 = vrot.slane %v594_v43, 7 }
 0x18d   : > { %v714_v28 = vpack.c.bf16 %v694_v10, %v692_v34  ;;  %v1870_v49 = vadd.f32 %v1812_v56, %v1722_v54  ;;  %v1721_v32 = vsel %vm1669_vm10, %v4355_v14, 0.0  ;;  %v5130_v44 = vrot.slane %v4205_v35, 7  ;;  %v1978_v63 = vpop.permute.xlu0 %1977 }
 0x18e   : > { %v1810_v55 = vsel %vm630_vm0, %v1806_v22, %v5129_v37  ;;  %v633_v61 = vsel %vm630_vm0, %v624_v39, %v626_v13  ;;  %v1723_v11 = vsel %vm1671_vm15, %v4355_v14, 0.0  ;;  %v1773_v7 = vsel %vm1669_vm10, %v4358_v46, 0.0  ;;  %v2518_v14 = vld [vmem:[%s5073_s1 + $0xc] ss:$16 sps:$4 sm:$0xff]   ;;  %v2519_v46 = vld [vmem:[%s5073_s1 + $0x20] ss:$16 sps:$4 sm:$0xff]  }
 0x18f   : > { %v1872_v18 = vadd.f32 %v1810_v55, %v1724_v26  ;;  %1131 = vmatprep.subr.bf16.mxu1 %v714_v28  ;;  %v631_v6 = vsel %vm630_vm0, %v626_v13, %v5130_v44  ;;  %v691_v36 = vadd.f32 %v633_v61, %v542_v42  ;;  %v1805_v24 = vrot.slane %v1773_v7, 7 }
 0x190   : > { %v693_v40 = vadd.f32 %v631_v6, %v544_v27  ;;  %vm2225_vm15 = vcmask 1043456  }
 0x191   : > { %v1892_v23 = vpack.c.bf16 %v1872_v18, %v1870_v49  ;;  %v1809_v35 = vsel %vm630_vm0, %v1805_v24, %v1807_v9  ;;  %v1811_v47 = vsel %vm630_vm0, %v1803_v30, %v1805_v24  ;;  %vm2056_vm0 = vcmask 261120  }
 0x192   : > { %v713_v57 = vpack.c.bf16 %v693_v40, %v691_v36  ;;  %v1869_v58 = vadd.f32 %v1811_v47, %v1721_v32  ;;  %v1871_v39 = vadd.f32 %v1809_v35, %v1723_v11 }
 0x193   : > { %1919 = vmatprep.subr.bf16.mxu0 %v1892_v23 }
 0x194   : > { %1132 = vmatpush1.bf16.msra.mxu1 %v713_v57  ;;  %v1891_v50 = vpack.c.bf16 %v1871_v39, %v1869_v58  ;;  %v2521_v39 = vld [vmem:[#allocation6] sm:$0xff]  }
 0x196   : > { %1920 = vmatpush1.bf16.msra.mxu0 %v1891_v50  ;;  %v2698_v50 = vmov 0.0  }
 0x197   : > { %1150 = vmatmul.mubr.bf16.vlgmr.msra.gmra.mrb[0].mxu1 %v2517_v45  ;;  %v2522_v45 = vld [vmem:[#allocation6 + $0x8] sm:$0xff]  }
 0x198   : > { %1159 = vmatprep.mubr.bf16.mxu1 %v5123_v53 }
 0x199   : > { %1938 = vmatmul.mubr.bf16.vlgmr.msra.gmra.mrb[0].mxu0 %v2518_v14  ;;  %v2029_v14 = vpop.permute.xlu0 %2028 }
 0x19a   : > { %1947 = vmatprep.mubr.bf16.mxu0 %v5123_v53 }
 0x19f   : > { %1160 = vmatmul.mubr.bf16.gmra.mrb[4].mxu1 %v2519_v46 }
 0x1a0   : > { %2105 = vmatprep.mubr.bf16.mxu1 %v5123_v53 }
 0x1a1   : > { %1948 = vmatmul.mubr.bf16.gmra.mrb[4].mxu0 %v2520_v17  ;;  %v2039_v17 = vpop.permute.xlu0 %2038 }
 0x1a2   : > { %2095 = vmatprep.mubr.bf16.mxu0 %v5123_v53  ;;  %v1983_v53 = vpop.permute.xlu1 %1982 }
 0x1a6   : > { %v1988_v49 = vpop.permute.xlu1 %1987 }
 0x1aa   : > { %v2034_v46 = vpop.permute.xlu1 %2033 }
 0x26a   : > { %v1151_v9 = vpop.f32.mrb[0].mxu1 }
 0x26b   : > { %v1153_v12 = vpop.f32.mrb[1].mxu1 }
 0x26c   : > { %v1155_v2 = vpop.f32.mrb[2].mxu1  ;;  %v1939_v19 = vpop.f32.mrb[0].mxu0 }
 0x26d   : > { %v1157_v25 = vpop.f32.mrb[3].mxu1  ;;  %v2417_v0 = vadd.f32 %v1939_v19, %v1151_v9  ;;  %v1941_v62 = vpop.f32.mrb[1].mxu0 }
 0x26e   : > { %v2418_v20 = vadd.f32 %v1941_v62, %v1153_v12  ;;  %v1943_v52 = vpop.f32.mrb[2].mxu0  ;;  %v2044_v9 = vpop.permute.xlu1 %2043 }
 0x26f   : > { %v1990_v8 = vadd.f32 %v2417_v0, %v1973_v31  ;;  %v2419_v30 = vadd.f32 %v1943_v52, %v1155_v2  ;;  %v1945_v3 = vpop.f32.mrb[3].mxu0 }
 0x270   : > { %v1991_v1 = vadd.f32 %v2418_v20, %v1973_v31  ;;  %v2420_v48 = vadd.f32 %v1945_v3, %v1157_v25 }
 0x271   : > { %v1998_v51 = vmul.f32 0.01, %v1990_v8  ;;  %v1992_v29 = vadd.f32 %v2419_v30, %v1978_v63 }
 0x272   : > { %v1161_v15 = vpop.f32.mrb[4].mxu1  ;;  %v1999_v16 = vmul.f32 0.01, %v1991_v1  ;;  %v1993_v5 = vadd.f32 %v2420_v48, %v1978_v63 }
 0x273   : > { %v1163_v54 = vpop.f32.mrb[5].mxu1  ;;  %v2000_v26 = vmul.f32 0.01, %v1992_v29  ;;  %v2006_v38 = vmax.f32 %v1990_v8, %v1998_v51 }
 0x274   : > { %v1165_v60 = vpop.f32.mrb[6].mxu1  ;;  %v2001_v4 = vmul.f32 0.01, %v1993_v5  ;;  %v1949_v21 = vpop.f32.mrb[4].mxu0  ;;  %v2007_v42 = vmax.f32 %v1991_v1, %v1999_v16 }
 0x275   : > { %v1167_v59 = vpop.f32.mrb[7].mxu1  ;;  %v2008_v34 = vmax.f32 %v1992_v29, %v2000_v26  ;;  %v2421_v10 = vadd.f32 %v1949_v21, %v1161_v15  ;;  %v1951_v22 = vpop.f32.mrb[5].mxu0 }
 0x276   : > { %v2009_v27 = vmax.f32 %v1993_v5, %v2001_v4  ;;  %v2422_v43 = vadd.f32 %v1951_v22, %v1163_v54  ;;  %v1953_v28 = vpop.f32.mrb[6].mxu0 }
 0x277   : > { %v2018_v37 = vpack.c.bf16 %v2008_v34, %v2006_v38  ;;  %v1994_v55 = vadd.f32 %v2421_v10, %v1983_v53  ;;  %v2423_v56 = vadd.f32 %v1953_v28, %v1165_v60  ;;  %v1955_v13 = vpop.f32.mrb[7].mxu0 }
 0x278   : > { %v1995_v18 = vadd.f32 %v2422_v43, %v1983_v53  ;;  %v2424_v32 = vadd.f32 %v1955_v13, %v1167_v59  ;;  %v2019_v44 = vpack.c.bf16 %v2009_v27, %v2007_v42 }
 0x279   : > { %v2002_v6 = vmul.f32 0.01, %v1994_v55  ;;  %v1996_v61 = vadd.f32 %v2423_v56, %v1988_v49  ;;  %v2137_v56 = vpop.permute.xlu0 %2136 }
 0x27a   : > { %v2003_v11 = vmul.f32 0.01, %v1995_v18  ;;  %v1997_v7 = vadd.f32 %v2424_v32, %v1988_v49  ;;  %2063 = vmatprep.subr.bf16.mxu0 %v2019_v44  ;;  %2413 = vmatprep.subr.bf16.mxu1 %v2019_v44 }
 0x27b   : > { %v2004_v23 = vmul.f32 0.01, %v1996_v61  ;;  %2064 = vmatpush1.bf16.msra.mxu0 %v2018_v37  ;;  %2415 = vmatpush1.bf16.msra.mxu1 %v2018_v37  ;;  %v2010_v40 = vmax.f32 %v1994_v55, %v2002_v6  ;;  %v2132_v55 = vld [vmem:[%s5077_s5] sm:$0xf] }
 0x27c   : > { %v2005_v36 = vmul.f32 0.01, %v1997_v7  ;;  %v2011_v57 = vmax.f32 %v1995_v18, %v2003_v11  ;;  %v2221_v11 = vpop.permute.xlu1 %2220 }
 0x27d   : > { %v2012_v24 = vmax.f32 %v1996_v61, %v2004_v23 }
 0x27e   : > { %v2013_v35 = vmax.f32 %v1997_v7, %v2005_v36 }
 0x27f   : > { %v2020_v47 = vpack.c.bf16 %v2012_v24, %v2010_v40 }
 0x280   : > { %v2021_v58 = vpack.c.bf16 %v2013_v35, %v2011_v57 }
 0x282   : > { %2065 = vmatprep.subr.bf16.mxu0 %v2021_v58  ;;  %2414 = vmatprep.subr.bf16.mxu1 %v2021_v58 }
 0x283   : > { %2066 = vmatpush1.bf16.msra.mxu0 %v2020_v47  ;;  %2416 = vmatpush1.bf16.msra.mxu1 %v2020_v47 }
 0x286   : > { %2395 = vmatmul.mubr.msk.bf16.vlgmr.msra.gmra.mrb[8].mxu0 %vm2056_vm0, %v2521_v39  ;;  %2396 = vmatmul.mubr.msk.bf16.vlgmr.msra.gmra.mrb[8].mxu1 %vm2056_vm0, %v2522_v45 }
 0x287   : > { %2206 = vmatprep.mubr.f32.mxu1 %v2698_v50 }
 0x359   : > { %v2097_v31 = vpop.f32.mrb[8].mxu0  ;;  %v2107_v12 = vpop.f32.mrb[8].mxu1 }
 0x35a   : > { %v2098_v2 = vadd.f32 %v2097_v31, %v2029_v14  ;;  %v2108_v19 = vadd.f32 %v2107_v12, %v2039_v17  ;;  %v2099_v25 = vpop.f32.mrb[9].mxu0  ;;  %v2109_v0 = vpop.f32.mrb[9].mxu1  ;;  %v2699_v31 = vmov 1966171168  }
 0x35b   : > { %v2100_v62 = vadd.f32 %v2099_v25, %v2029_v14  ;;  %v2110_v20 = vadd.f32 %v2109_v0, %v2039_v17  ;;  %v2101_v52 = vpop.f32.mrb[10].mxu0  ;;  %v2111_v8 = vpop.f32.mrb[10].mxu1  ;;  %v2260_v12 = vunpack.c.l.s4 %v2699_v31 }
 0x35c   : > { %v2116_v30 = vmul.f32 0.01, %v2098_v2  ;;  %v2120_v3 = vmul.f32 0.01, %v2108_v19  ;;  %v2102_v63 = vadd.f32 %v2101_v52, %v2034_v46  ;;  %v2112_v1 = vadd.f32 %v2111_v8, %v2044_v9  ;;  %v2103_v48 = vpop.f32.mrb[11].mxu0  ;;  %v2113_v51 = vpop.f32.mrb[11].mxu1 }
 0x35d   : > { %v2117_v29 = vmul.f32 0.01, %v2100_v62  ;;  %v2121_v15 = vmul.f32 0.01, %v2110_v20  ;;  %v2104_v53 = vadd.f32 %v2103_v48, %v2034_v46  ;;  %v2114_v16 = vadd.f32 %v2113_v51, %v2044_v9  ;;  %v2244_v14 = vpop.permute.xlu0 %2243 }
 0x35e   : > { %v2118_v5 = vmul.f32 0.01, %v2102_v63  ;;  %v2122_v54 = vmul.f32 0.01, %v2112_v1  ;;  %v2124_v4 = vmax.f32 %v2098_v2, %v2116_v30  ;;  %v2128_v21 = vmax.f32 %v2108_v19, %v2120_v3 }
 0x35f   : > { %v2119_v26 = vmul.f32 0.01, %v2104_v53  ;;  %v2123_v60 = vmul.f32 0.01, %v2114_v16  ;;  %v2125_v34 = vmax.f32 %v2100_v62, %v2117_v29  ;;  %v2129_v10 = vmax.f32 %v2110_v20, %v2121_v15 }
 0x360   : > { %v2126_v59 = vmax.f32 %v2102_v63, %v2118_v5  ;;  %v2130_v38 = vmax.f32 %v2112_v1, %v2122_v54  ;;  %v2249_v2 = vrot.slane %v2244_v14, %v2991_v41  ;;  %v2261_v20 = vunpack.c.0.s8 %v2260_v12 }
 0x361   : > { %v2127_v22 = vmax.f32 %v2104_v53, %v2119_v26  ;;  %v2131_v42 = vmax.f32 %v2114_v16, %v2123_v60  ;;  %v5131_v41 = vlaneseq }
 0x362   : > { %v2407_v27 = vpack.c.bf16 %v2126_v59, %v2124_v4  ;;  %v2411_v43 = vpack.c.bf16 %v2130_v38, %v2128_v21  ;;  %v2264_v63 = vsub.s32 %v2261_v20, %v2913_v33 }
 0x363   : > { %v2405_v28 = vpack.c.bf16 %v2127_v22, %v2125_v34  ;;  %v2409_v37 = vpack.c.bf16 %v2131_v42, %v2129_v10  ;;  %vm2276_vm7 = vcmp.lt.s32.totalorder %v5131_v41, 256 }
 0x365   : > { %2406 = vmatprep.subr.bf16.mxu1 %v2405_v28 }
 0x366   : > { %2408 = vmatpush1.bf16.msra.mxu1 %v2407_v27 }
 0x367   : > { %2410 = vmatprep.subr.bf16.mxu1 %v2409_v37 }
 0x36a   : > { %2412 = vmatpush1.bf16.msra.mxu1 %v2411_v43 }
 0x36d   : > { %2397 = vmatmul.mubr.msk.f32.vlgmr.msra.gmra.mrb[12].mxu1 %vm2056_vm0, %v2132_v55 }
 0x440   : > { %v2208_v13 = vpop.f32.mrb[12].mxu1 }
 0x441   : > { %v2209_v49 = vadd.f32 %v2208_v13, %v2137_v56  ;;  %v2210_v18 = vpop.f32.mrb[13].mxu1 }
 0x442   : > { %v2211_v32 = vadd.f32 %v2210_v18, %v2137_v56 }
 0x443   : > { %v2213_v44 = vmul.f32 0.01, %v2209_v49 }
 0x444   : > { %v2214_v6 = vmul.f32 0.01, %v2211_v32 }
 0x445   : > { %v2215_v61 = vmax.f32 %v2209_v49, %v2213_v44 }
 0x446   : > { %v2216_v7 = vmax.f32 %v2211_v32, %v2214_v6 }
 0x447   : > { %v2223_v23 = vmul.f32 %v2221_v11, %v2215_v61 }
 0x448   : > { %v2224_v36 = vmul.f32 %v2221_v11, %v2216_v7 }
 0x449   : > { %v2226_v40 = vsel %vm2225_vm15, %v2223_v23, 0.0 }
 0x44a   : > { %v2227_v24 = vrot.slane %v2226_v40, 4  ;;  %v2233_v57 = vsel %vm2225_vm15, %v2224_v36, 0.0 }
 0x44b   : > { %v2234_v35 = vrot.slane %v2233_v57, 4 }
 0x44c   : > { %v2228_v47 = vadd.f32 %v2227_v24, %v2226_v40 }
 0x44d   : > { %v2235_v58 = vadd.f32 %v2234_v35, %v2233_v57 }
 0x44e   : > { %v2229_v39 = vrot.slane %v2228_v47, 2 }
 0x44f   : > { %v2236_v45 = vrot.slane %v2235_v58, 2 }
 0x450   : > { %v2230_v50 = vadd.f32 %v2229_v39, %v2228_v47 }
 0x451   : > { %v2237_v46 = vadd.f32 %v2236_v45, %v2235_v58 }
 0x452   : > { %v2231_v17 = vrot.slane %v2230_v50, 1 }
 0x453   : > { %v2238_v9 = vrot.slane %v2237_v46, 1 }
 0x454   : > { %v2232_v19 = vadd.f32 %v2231_v17, %v2230_v50 }
 0x455   : > { %v2239_v25 = vadd.f32 %v2238_v9, %v2237_v46 }
 0x456   : > { %v2250_v0 = vadd.f32 %v2249_v2, %v2232_v19 }
 0x457   : > { %v2251_v62 = vadd.f32 %v2249_v2, %v2239_v25 }
 0x458   : > { %v2252_v52 = vmul.f32 0.01, %v2250_v0 }
 0x459   : > { %v2253_v8 = vmul.f32 0.01, %v2251_v62 }
 0x45a   : > { %v2254_v30 = vmax.f32 %v2250_v0, %v2252_v52 }
 0x45b   : > { %v2255_v3 = vmax.f32 %v2251_v62, %v2253_v8 }
 0x45d   : > { %v2258_v1 = vcombine.low %v2254_v30, %v2255_v3 }
 0x45f   : > { %v2265_v48 = vrot.slane %v2258_v1, %v2264_v63 }
 0x461   : > { %v2272_v51 = vrot.slane %v2265_v48, %v2264_v63 }
 0x463   : > { %2278 = vst.msk [vmem:[%s365_s18] sm:$0x3] %vm2276_vm7, %v2272_v51 }
 0x464   : > { %2634 = shalt.err (!%p2631_p7)
}
 0x465   : > { %s2635_s25 = scalar_lea.hbm %s5029_s19, 32  ;;  %s2639_s21 = scalar_lea.hbm %s5081_s9, 128 }
 0x466   : > { %p2636_p9 = scmp.ne.s32.totalorder %s5029_s19, %s2635_s25  ;;  %p2640_p0 = scmp.lt.u32.totalorder %s5029_s19, %s5081_s9 }
 0x467   : > { %p2641_p2 = scmp.lt.u32.totalorder %s2639_s21, %s2635_s25  ;;  %p2643_p1 = scmp.lt.u32.totalorder %s2635_s25, %s5029_s19 }
 0x468   : > { %p2637_p11 = pnand %p2636_p9, %p2837_p12 }
 0x469   : > { %p2642_p10 = por %p2641_p2, %p2640_p0 }
 0x46a   : > { %p2638_p5 = pneg %p2637_p11 }
 0x46b   : > { %p2644_p4 = por %p2643_p1, %p2642_p10 }
 0x46d   : > { %p2645_p6 = pnand %p2644_p4, %p2638_p5 }
 0x46f   : > { %2648 = shalt.err (!%p2645_p6)
}
 0x470   : > { %2455 = dma.vmem_to_hbm [thread:$0]  (%p2837_p12), %s5031_s26, 32, %s5029_s19, %s2280_s30  }
 0x471 PF: > { %p2472_p8 = scmp.ge.s32.totalorder %s2691_s14, 2  ;;  %s2306_s23 = sand.u32 1, %s2679_s11  }
 0x472   : > { %p5132_p13 = scmp.ne.s32.totalorder %s5105_s17, 0  ;;  %s2307_s24 = scalar_lea.sflag [#allocation5], %s2306_s23 }
 0x474   : > { %p2466_p3 = pnand %p2472_p8, %p5132_p13 }
 0x476   : > { %2674 = dma.done.wait (!%p2466_p3), %s2307_s24, 32  }
 0x477   : > { %2676 = vsyncadd (!%p2466_p3), %s2307_s24, 4294967264  ;;  %s5133_s14 = sld [smem:[#allocation12_spill]]  ;;  %s5134_s11 = smov %s2683_s12 }
 0x478   : > { %s5135_s12 = smov %s2687_s13  ;;  %s5136_s13 = smov %s2833_s28 }
 0x47d   : > { %p25_p7 = scmp.ge.s32.totalorder %s5133_s14, 6  }
 0x47f   :  { %27 = sbr.rel (!%p25_p7) target bundleno = 9 (0x9), region = 105 }
 0x486   :  { %2312 = vsyncpa [#allocation4], 1 }
 0x487   :  { %2314 = vsyncpa [#allocation4 + $0x1], 1 }
 0x488   :  { %2315 = vsyncpa [#allocation7], 1 }
 0x489   :  { %2316 = vsyncpa [#allocation5], 1 }
 0x48a   :  { %2318 = vsyncpa [#allocation5 + $0x1], 1 }

</bundles_post_ra>
